<compile_context>
chip_gen: v7x
topology: tpu7x:2x2x1
jax: 0.10.0
libtpu: 0.0.40
codegen_flags: <defaults>
</compile_context>

<pallas_src>
import numpy as np
import jax
import jax.numpy as jnp
from jax.experimental import pallas as pl
from jax.experimental.pallas import tpu as pltpu


# ----------------------------------------------------------------------------
# Kernel 1: Multi_Cross_Attention_Layer (self-attention variant) fused with
#           the t-LSTM input projection (wih_t).  Output = attn @ wih_t.
# ----------------------------------------------------------------------------
def _cross_attention_kernel(x_ref, wqkv_ref, wog_ref, o_ref):
    f32 = jnp.float32
    B, T, D = x_ref.shape

    w_qkv = wqkv_ref[...]            # (D, 6D)   [Qt|Kt|Vt|Qd|Kd|Vd]
    w_og = wog_ref[...]              # (2D, 4H)  out_linear folded with wih_t

    def softmax_rows(s):
        s = s - jnp.max(s, axis=-1, keepdims=True)
        e = jnp.exp(s)
        inv = pl.reciprocal(jnp.sum(e, axis=-1, keepdims=True), approx=True)
        return e * inv

    # Contract the feature dim of both operands: q @ k^T without an explicit
    # transpose of k (keeps the XLU free).
    dn = (((1,), (1,)), ((), ()))

    for b in range(B):               # B is small and static -> fully unrolled
        xb = x_ref[b]                                              # (T, D)
        qkv = jnp.dot(xb, w_qkv, preferred_element_type=f32)       # (T, 6D)
        q_t = qkv[:, 0 * D:1 * D]
        k_t = qkv[:, 1 * D:2 * D]
        v_t = qkv[:, 2 * D:3 * D]
        q_d = qkv[:, 3 * D:4 * D]
        k_d = qkv[:, 4 * D:5 * D]
        v_d = qkv[:, 5 * D:6 * D]
        a_t = softmax_rows(
            jax.lax.dot_general(q_d, k_t, dn, preferred_element_type=f32))
        a_d = softmax_rows(
            jax.lax.dot_general(q_t, k_d, dn, preferred_element_type=f32))
        o_t = jnp.dot(a_t, v_t, preferred_element_type=f32)        # (T, D)
        o_d = jnp.dot(a_d, v_d, preferred_element_type=f32)        # (T, D)
        cat = jnp.concatenate([o_t, o_d], axis=-1)                 # (T, 2D)
        # (T, 4H): t-LSTM gate pre-activations (biases folded into the
        # recurrence kernel's b_gates_t), lane-dense output store.
        o_ref[b] = jnp.dot(cat, w_og, preferred_element_type=f32)


def cross_attention_gates(x_btd, f):
    B, T, D = x_btd.shape
    G = f["w_out_gates"].shape[1]    # 4H
    return pl.pallas_call(
        _cross_attention_kernel,
        out_shape=jax.ShapeDtypeStruct((B, T, G), jnp.float32),
        grid_spec=pltpu.PrefetchScalarGridSpec(
            num_scalar_prefetch=0,
            grid=(1,),
            in_specs=[pl.BlockSpec((B, T, D), lambda i: (0, 0, 0)),
                      pl.BlockSpec((D, 6 * D), lambda i: (0, 0)),
                      pl.BlockSpec((2 * D, G), lambda i: (0, 0))],
            out_specs=pl.BlockSpec((B, T, G), lambda i: (0, 0, 0)),
        ),
        compiler_params=pltpu.CompilerParams(dimension_semantics=("arbitrary",)),
    )(x_btd, f["w_qkv"], f["w_out_gates"])


# ----------------------------------------------------------------------------
# Kernel 2: GridLSTM recurrence + final GridLSTM_Net projections (fused)
# ----------------------------------------------------------------------------
def _grid_lstm_kernel(gx_ref, wt_ref, bt_ref, wd_ref, bd_ref,
                      wtf_ref, btf_ref, wdf_ref, bdf_ref,
                      out_t_ref, out_d_ref,
                      h_t_scr, c_t_scr, h_d_scr, c_d_scr, hs_t, hs_d):
    f32 = jnp.float32
    TS, B, G = gx_ref.shape
    H = h_t_scr.shape[-1]

    @pl.when(pl.program_id(0) == 0)
    def _():
        h_t_scr[...] = jnp.zeros_like(h_t_scr)
        c_t_scr[...] = jnp.zeros_like(c_t_scr)
        h_d_scr[...] = jnp.zeros_like(h_d_scr)
        c_d_scr[...] = jnp.zeros_like(c_d_scr)

    w_t = wt_ref[...]          # (2H, 4H)  folded [whh_t | d_lin@wih_t]
    b_t = bt_ref[...]          # (1, 4H)   b_lstm_t + (b_out + d_lin_b)@wih_t
    w_d = wd_ref[...]          # (2H, 4H)  folded [t_lin@wih_d | d_lin@wih_d + whh_d]
    b_d = bd_ref[...]          # (1, 4H)

    def cell(gates, c_prev):   # PyTorch LSTMCell gate order: i, f, g, o
        i = jax.nn.sigmoid(gates[:, 0 * H:1 * H])
        f = jax.nn.sigmoid(gates[:, 1 * H:2 * H])
        g = jnp.tanh(gates[:, 2 * H:3 * H])
        o = jax.nn.sigmoid(gates[:, 3 * H:4 * H])
        c_new = f * c_prev + i * g
        return o * jnp.tanh(c_new), c_new

    h_t = h_t_scr[...]
    c_t = c_t_scr[...]
    h_d = h_d_scr[...]
    c_d = c_d_scr[...]

    # Fully unrolled TS-step recurrence; 2 small matmuls per timestep
    # (x-side contribution of the t-LSTM was precomputed by kernel 1).
    for ts in range(TS):
        hh = jnp.concatenate([h_t, h_d], axis=-1)                  # (B, 2H)
        gates_t = (gx_ref[ts]
                   + jnp.dot(hh, w_t, preferred_element_type=f32) + b_t)
        h_t, c_t = cell(gates_t, c_t)
        zd = jnp.concatenate([h_t, h_d], axis=-1)                  # (B, 2H)
        gates_d = jnp.dot(zd, w_d, preferred_element_type=f32) + b_d
        h_d, c_d = cell(gates_d, c_d)
        hs_t[pl.ds(ts * B, B), :] = h_t
        hs_d[pl.ds(ts * B, B), :] = h_d

    # Carry state to the next grid step.
    h_t_scr[...] = h_t
    c_t_scr[...] = c_t
    h_d_scr[...] = h_d
    c_d_scr[...] = c_d

    # Batched GridLSTM_Net output projections: one matmul + one slab store each.
    out_t_ref[...] = (jnp.dot(hs_t[...], wtf_ref[...], preferred_element_type=f32)
                      + btf_ref[...])
    out_d_ref[...] = (jnp.dot(hs_d[...], wdf_ref[...], preferred_element_type=f32)
                      + bdf_ref[...])


def _pick_ts(T, max_ts=8):
    ts = min(T, max_ts)
    while T % ts:
        ts -= 1
    return ts


def grid_lstm_recurrence(gx_tbg, f):
    T, B, G = gx_tbg.shape
    H, D = f["net_t_w"].shape
    TS = _pick_ts(T)

    def w(shape):
        return pl.BlockSpec(shape, lambda g: (0,) * len(shape))

    out_t_flat, out_d_flat = pl.pallas_call(
        _grid_lstm_kernel,
        out_shape=(jax.ShapeDtypeStruct((T * B, D), jnp.float32),
                   jax.ShapeDtypeStruct((T * B, D), jnp.float32)),
        grid_spec=pltpu.PrefetchScalarGridSpec(
            num_scalar_prefetch=0,
            grid=(T // TS,),
            in_specs=[pl.BlockSpec((TS, B, G), lambda g: (g, 0, 0)),
                      w((2 * H, 4 * H)), w((1, 4 * H)),
                      w((2 * H, 4 * H)), w((1, 4 * H)),
                      w((H, D)), w((1, D)), w((H, D)), w((1, D))],
            out_specs=[pl.BlockSpec((TS * B, D), lambda g: (g, 0)),
                       pl.BlockSpec((TS * B, D), lambda g: (g, 0))],
            scratch_shapes=[pltpu.VMEM((B, H), jnp.float32)] * 4
                         + [pltpu.VMEM((TS * B, H), jnp.float32)] * 2,
        ),
        compiler_params=pltpu.CompilerParams(dimension_semantics=("arbitrary",)),
    )(gx_tbg, f["w_gates_t"], f["b_gates_t"], f["w_gates_d"], f["b_gates_d"],
      f["net_t_w"], f["net_t_b"], f["net_d_w"], f["net_d_b"])
    # (T*B, D) rows are (t, b) row-major -> trivial reshape back to (T, B, D).
    return out_t_flat.reshape(T, B, D), out_d_flat.reshape(T, B, D)


# ----------------------------------------------------------------------------
# Full GridLSTM_Net forward
# ----------------------------------------------------------------------------
def grid_lstm_net_forward(x, fused):
    # x: (T, B, D).  Attention works batch-major (like the module's permute);
    # the recurrence consumes time-major gate pre-activations (T, B, 4H).
    x_btd = jnp.transpose(x, (1, 0, 2))
    gx_btg = cross_attention_gates(x_btd, fused)        # (B, T, 4H)
    gx_tbg = jnp.transpose(gx_btg, (1, 0, 2))           # (T, B, 4H)
    return grid_lstm_recurrence(gx_tbg, fused)


# ----------------------------------------------------------------------------
# Host-side weight fusion / folding (exact algebraic rewrites of the module)
# ----------------------------------------------------------------------------
def prepare_fused_params(p):
    hi = jax.lax.Precision.HIGHEST
    mm = lambda a, b: jnp.matmul(a, b, precision=hi)
    f = {}
    # Attention: one fused QKV weight for both streams.
    f["w_qkv"] = jnp.concatenate([p["wq_t"], p["wk_t"], p["wv_t"],
                                  p["wq_d"], p["wk_d"], p["wv_d"]], axis=1)
    # Attention out_linear folded with t-LSTM input projection: (2D, 4H).
    f["w_out_gates"] = mm(p["w_out"], p["wih_t"])
    # t-LSTM hidden-side gates: gates_t = gx + [h_t, h_d] @ W_t + b_t
    f["w_gates_t"] = jnp.concatenate(
        [p["whh_t"], mm(p["d_lin_w"], p["wih_t"])], axis=0)
    f["b_gates_t"] = p["b_lstm_t"] + mm(p["b_out"] + p["d_lin_b"], p["wih_t"])
    # d-LSTM: gates_d = [h_t_new, h_d] @ W_d + b_d   (t_Linear/d_Linear folded)
    f["w_gates_d"] = jnp.concatenate(
        [mm(p["t_lin_w"], p["wih_d"]),
         mm(p["d_lin_w"], p["wih_d"]) + p["whh_d"]], axis=0)
    f["b_gates_d"] = p["b_lstm_d"] + mm(p["t_lin_b"] + p["d_lin_b"], p["wih_d"])
    # GridLSTM_Net output projections.
    f["net_t_w"] = p["net_t_w"]
    f["net_t_b"] = p["net_t_b"]
    f["net_d_w"] = p["net_d_w"]
    f["net_d_b"] = p["net_d_b"]
    return f


# ----------------------------------------------------------------------------
# Deterministic parameter init (synthetic; shapes follow the module __init__)
# ----------------------------------------------------------------------------
def init_params(key, hidden_dim, input_size):
    D, H = input_size, hidden_dim
    ks = jax.random.split(key, 24)

    def u(k, shape, fan_in):
        bound = 1.0 / np.sqrt(fan_in)
        return jax.random.uniform(k, shape, jnp.float32, -bound, bound)

    p = {}
    # Multi_Cross_Attention_Layer (hidden_dim=input_size, is_bi_rnn=False)
    p["wq_t"] = u(ks[0], (D, D), D)
    p["wk_t"] = u(ks[1], (D, D), D)
    p["wv_t"] = u(ks[2], (D, D), D)
    p["wq_d"] = u(ks[3], (D, D), D)
    p["wk_d"] = u(ks[4], (D, D), D)
    p["wv_d"] = u(ks[5], (D, D), D)
    p["w_out"] = u(ks[6], (2 * D, D), 2 * D)
    p["b_out"] = u(ks[7], (1, D), 2 * D)
    # GridLSTM: t_Linear / d_Linear (hidden_dim -> input_size)
    p["t_lin_w"] = u(ks[8], (H, D), H)
    p["t_lin_b"] = u(ks[9], (1, D), H)
    p["d_lin_w"] = u(ks[10], (H, D), H)
    p["d_lin_b"] = u(ks[11], (1, D), H)
    # LSTMCells (gate order i, f, g, o); bias = b_ih + b_hh pre-combined
    p["wih_t"] = u(ks[12], (D, 4 * H), H)
    p["whh_t"] = u(ks[13], (H, 4 * H), H)
    p["b_lstm_t"] = u(ks[14], (1, 4 * H), H)
    p["wih_d"] = u(ks[15], (D, 4 * H), H)
    p["whh_d"] = u(ks[16], (H, 4 * H), H)
    p["b_lstm_d"] = u(ks[17], (1, 4 * H), H)
    # GridLSTM_Net: t_linear / d_linear (hidden_dim -> input_size)
    p["net_t_w"] = u(ks[18], (H, D), H)
    p["net_t_b"] = u(ks[19], (1, D), H)
    p["net_d_w"] = u(ks[20], (H, D), H)
    p["net_d_b"] = u(ks[21], (1, D), H)
    return p


# ----------------------------------------------------------------------------
# Pure-JAX reference (mirrors the PyTorch forward, unfolded weights)
# ----------------------------------------------------------------------------
def reference_forward(x, p, hidden_dim):
    T, B, D = x.shape
    H = hidden_dim
    hi = jax.lax.Precision.HIGHEST
    inp = jnp.transpose(x, (1, 0, 2))
    q_t = jnp.matmul(inp, p["wq_t"], precision=hi)
    k_t = jnp.matmul(inp, p["wk_t"], precision=hi)
    v_t = jnp.matmul(inp, p["wv_t"], precision=hi)
    q_d = jnp.matmul(inp, p["wq_d"], precision=hi)
    k_d = jnp.matmul(inp, p["wk_d"], precision=hi)
    v_d = jnp.matmul(inp, p["wv_d"], precision=hi)
    alpha_t = jax.nn.softmax(jnp.einsum("btd,bsd->bts", q_d, k_t, precision=hi), axis=-1)
    alpha_d = jax.nn.softmax(jnp.einsum("btd,bsd->bts", q_t, k_d, precision=hi), axis=-1)
    out_t = jnp.matmul(alpha_t, v_t, precision=hi)
    out_d = jnp.matmul(alpha_d, v_d, precision=hi)
    attn = jnp.matmul(jnp.concatenate([out_t, out_d], -1), p["w_out"], precision=hi) + p["b_out"][0]
    xa = jnp.transpose(attn, (1, 0, 2))

    def lstm_cell(x_in, h, c, wih, whh, b):
        gates = (jnp.matmul(x_in, wih, precision=hi)
                 + jnp.matmul(h, whh, precision=hi) + b[0])
        i, f, g, o = jnp.split(gates, 4, axis=-1)
        c_new = jax.nn.sigmoid(f) * c + jax.nn.sigmoid(i) * jnp.tanh(g)
        return jax.nn.sigmoid(o) * jnp.tanh(c_new), c_new

    h_t = jnp.zeros((B, H)); c_t = jnp.zeros((B, H))
    h_d = jnp.zeros((B, H)); c_d = jnp.zeros((B, H))
    outs_t, outs_d = [], []
    for t in range(T):
        xt = xa[t]
        d2h_t = jnp.matmul(h_d, p["d_lin_w"], precision=hi) + p["d_lin_b"][0]
        h_t, c_t = lstm_cell(xt + d2h_t, h_t, c_t, p["wih_t"], p["whh_t"], p["b_lstm_t"])
        t2h_d = jnp.matmul(h_t, p["t_lin_w"], precision=hi) + p["t_lin_b"][0]
        d2h_d = jnp.matmul(h_d, p["d_lin_w"], precision=hi) + p["d_lin_b"][0]
        h_d, c_d = lstm_cell(t2h_d + d2h_d, h_d, c_d, p["wih_d"], p["whh_d"], p["b_lstm_d"])
        outs_t.append(h_t)
        outs_d.append(h_d)
    ot = jnp.matmul(jnp.stack(outs_t), p["net_t_w"], precision=hi) + p["net_t_b"][0]
    od = jnp.matmul(jnp.stack(outs_d), p["net_d_w"], precision=hi) + p["net_d_b"][0]
    return ot, od


if __name__ == "__main__":
    T, B = 8, 2              # sequence length, batch
    input_size = 16          # feature dim D
    hidden_dim = 32          # LSTM hidden H

    key = jax.random.PRNGKey(0)
    k_x, k_p = jax.random.split(key)
    x = jax.random.normal(k_x, (T, B, input_size), dtype=jnp.float32)
    params = init_params(k_p, hidden_dim, input_size)
    fused = prepare_fused_params(params)

    fwd = jax.jit(grid_lstm_net_forward)
    out_t, out_d = fwd(x, fused)
    out_t = jax.block_until_ready(out_t)
    out_d = jax.block_until_ready(out_d)

    ref_t, ref_d = reference_forward(x, params, hidden_dim)
    np.testing.assert_allclose(np.asarray(out_t), np.asarray(ref_t), rtol=5e-2, atol=5e-2)
    np.testing.assert_allclose(np.asarray(out_d), np.asarray(ref_d), rtol=5e-2, atol=5e-2)

    print("KERNEL_OK")
</pallas_src>

<mosaic_0001>
module attributes {stable_mosaic.version = 11 : i64} {
  func.func @_cross_attention_kernel(%arg0: i32, %arg1: memref<2x8x16xf32, #tpu.memory_space<vmem>>, %arg2: memref<16x96xf32, #tpu.memory_space<vmem>>, %arg3: memref<32x128xf32, #tpu.memory_space<vmem>>, %arg4: memref<2x8x128xf32, #tpu.memory_space<vmem>>) attributes {dimension_semantics = [#tpu.dimension_semantics<arbitrary>], iteration_bounds = array<i64: 1>, scalar_prefetch = 0 : i64, scratch_operands = 0 : i64, tpu.core_type = #tpu.core_type<tc>, window_params = [{pipeline_mode = #tpu.pipeline_mode<synchronous>, transform_indices = @transform_0, window_bounds = array<i64: 2, 8, 16>}, {pipeline_mode = #tpu.pipeline_mode<synchronous>, transform_indices = @transform_1, window_bounds = array<i64: 16, 96>}, {pipeline_mode = #tpu.pipeline_mode<synchronous>, transform_indices = @transform_2, window_bounds = array<i64: 32, 128>}, {pipeline_mode = #tpu.pipeline_mode<synchronous>, transform_indices = @transform_3, window_bounds = array<i64: 2, 8, 128>}]} {
    %c0 = arith.constant 0 : index
    %c0_0 = arith.constant 0 : index
    %0 = vector.load %arg2[%c0, %c0_0] : memref<16x96xf32, #tpu.memory_space<vmem>>, vector<16x96xf32>
    %c0_1 = arith.constant 0 : index
    %c0_2 = arith.constant 0 : index
    %1 = vector.load %arg3[%c0_1, %c0_2] : memref<32x128xf32, #tpu.memory_space<vmem>>, vector<32x128xf32>
    %c0_3 = arith.constant 0 : index
    %c0_4 = arith.constant 0 : index
    %c0_5 = arith.constant 0 : index
    %2 = vector.load %arg1[%c0_3, %c0_4, %c0_5] : memref<2x8x16xf32, #tpu.memory_space<vmem>>, vector<1x8x16xf32>
    %3 = vector.shape_cast %2 : vector<1x8x16xf32> to vector<8x16xf32>
    %cst = arith.constant dense<0.000000e+00> : vector<8x96xf32>
    %4 = tpu.matmul %3, %0, %cst {dimension_numbers = #tpu.dot_dimension_numbers<[1], [0], [0], [1], [0, 0, 1, 1], [], []>} : vector<8x16xf32>, vector<16x96xf32>, vector<8x96xf32> -> vector<8x96xf32>
    %5 = vector.extract_strided_slice %4 {offsets = [0, 0], sizes = [8, 16], strides = [1, 1]} : vector<8x96xf32> to vector<8x16xf32>
    %6 = vector.extract_strided_slice %4 {offsets = [0, 16], sizes = [8, 16], strides = [1, 1]} : vector<8x96xf32> to vector<8x16xf32>
    %7 = vector.extract_strided_slice %4 {offsets = [0, 32], sizes = [8, 16], strides = [1, 1]} : vector<8x96xf32> to vector<8x16xf32>
    %8 = vector.extract_strided_slice %4 {offsets = [0, 48], sizes = [8, 16], strides = [1, 1]} : vector<8x96xf32> to vector<8x16xf32>
    %9 = vector.extract_strided_slice %4 {offsets = [0, 64], sizes = [8, 16], strides = [1, 1]} : vector<8x96xf32> to vector<8x16xf32>
    %10 = vector.extract_strided_slice %4 {offsets = [0, 80], sizes = [8, 16], strides = [1, 1]} : vector<8x96xf32> to vector<8x16xf32>
    %cst_6 = arith.constant dense<0.000000e+00> : vector<8x8xf32>
    %11 = tpu.matmul %8, %6, %cst_6 {dimension_numbers = #tpu.dot_dimension_numbers<[1], [1], [0], [0], [0, 0, 1, 0], [], []>} : vector<8x16xf32>, vector<8x16xf32>, vector<8x8xf32> -> vector<8x8xf32>
    %cst_7 = arith.constant dense<0xFF800000> : vector<8xf32>
    %12 = vector.multi_reduction <maximumf>, %11, %cst_7 [1] : vector<8x8xf32> to vector<8xf32>
    %13 = vector.shape_cast %12 : vector<8xf32> to vector<8x1xf32>
    %14 = vector.broadcast %13 : vector<8x1xf32> to vector<8x8xf32>
    %15 = arith.subf %11, %14 : vector<8x8xf32>
    %16 = math.exp %15 : vector<8x8xf32>
    %cst_8 = arith.constant dense<0.000000e+00> : vector<8xf32>
    %17 = vector.multi_reduction <add>, %16, %cst_8 [1] : vector<8x8xf32> to vector<8xf32>
    %18 = vector.shape_cast %17 : vector<8xf32> to vector<8x1xf32>
    %19 = tpu.reciprocal %18 {approx = true} : vector<8x1xf32> -> vector<8x1xf32>
    %20 = vector.broadcast %19 : vector<8x1xf32> to vector<8x8xf32>
    %21 = arith.mulf %16, %20 : vector<8x8xf32>
    %cst_9 = arith.constant dense<0.000000e+00> : vector<8x8xf32>
    %22 = tpu.matmul %5, %9, %cst_9 {dimension_numbers = #tpu.dot_dimension_numbers<[1], [1], [0], [0], [0, 0, 1, 0], [], []>} : vector<8x16xf32>, vector<8x16xf32>, vector<8x8xf32> -> vector<8x8xf32>
    %cst_10 = arith.constant dense<0xFF800000> : vector<8xf32>
    %23 = vector.multi_reduction <maximumf>, %22, %cst_10 [1] : vector<8x8xf32> to vector<8xf32>
    %24 = vector.shape_cast %23 : vector<8xf32> to vector<8x1xf32>
    %25 = vector.broadcast %24 : vector<8x1xf32> to vector<8x8xf32>
    %26 = arith.subf %22, %25 : vector<8x8xf32>
    %27 = math.exp %26 : vector<8x8xf32>
    %cst_11 = arith.constant dense<0.000000e+00> : vector<8xf32>
    %28 = vector.multi_reduction <add>, %27, %cst_11 [1] : vector<8x8xf32> to vector<8xf32>
    %29 = vector.shape_cast %28 : vector<8xf32> to vector<8x1xf32>
    %30 = tpu.reciprocal %29 {approx = true} : vector<8x1xf32> -> vector<8x1xf32>
    %31 = vector.broadcast %30 : vector<8x1xf32> to vector<8x8xf32>
    %32 = arith.mulf %27, %31 : vector<8x8xf32>
    %cst_12 = arith.constant dense<0.000000e+00> : vector<8x16xf32>
    %33 = tpu.matmul %21, %7, %cst_12 {dimension_numbers = #tpu.dot_dimension_numbers<[1], [0], [0], [1], [0, 0, 1, 1], [], []>} : vector<8x8xf32>, vector<8x16xf32>, vector<8x16xf32> -> vector<8x16xf32>
    %cst_13 = arith.constant dense<0.000000e+00> : vector<8x16xf32>
    %34 = tpu.matmul %32, %10, %cst_13 {dimension_numbers = #tpu.dot_dimension_numbers<[1], [0], [0], [1], [0, 0, 1, 1], [], []>} : vector<8x8xf32>, vector<8x16xf32>, vector<8x16xf32> -> vector<8x16xf32>
    %35 = tpu.concatenate %33, %34 in 1 : vector<8x16xf32>, vector<8x16xf32> -> vector<8x32xf32>
    %cst_14 = arith.constant dense<0.000000e+00> : vector<8x128xf32>
    %36 = tpu.matmul %35, %1, %cst_14 {dimension_numbers = #tpu.dot_dimension_numbers<[1], [0], [0], [1], [0, 0, 1, 1], [], []>} : vector<8x32xf32>, vector<32x128xf32>, vector<8x128xf32> -> vector<8x128xf32>
    %c0_15 = arith.constant 0 : index
    %c0_16 = arith.constant 0 : index
    %c0_17 = arith.constant 0 : index
    %37 = vector.load %arg4[%c0_15, %c0_16, %c0_17] : memref<2x8x128xf32, #tpu.memory_space<vmem>>, vector<1x8x128xf32>
    %38 = vector.shape_cast %37 : vector<1x8x128xf32> to vector<8x128xf32>
    %39 = vector.shape_cast %36 : vector<8x128xf32> to vector<1x8x128xf32>
    tpu.vector_store %arg4[%c0_15, %c0_16, %c0_17], %39 {strides = array<i32>} : memref<2x8x128xf32, #tpu.memory_space<vmem>>, vector<1x8x128xf32>,
    %c1 = arith.constant 1 : index
    %c0_18 = arith.constant 0 : index
    %c0_19 = arith.constant 0 : index
    %40 = vector.load %arg1[%c1, %c0_18, %c0_19] : memref<2x8x16xf32, #tpu.memory_space<vmem>>, vector<1x8x16xf32>
    %41 = vector.shape_cast %40 : vector<1x8x16xf32> to vector<8x16xf32>
    %cst_20 = arith.constant dense<0.000000e+00> : vector<8x96xf32>
    %42 = tpu.matmul %41, %0, %cst_20 {dimension_numbers = #tpu.dot_dimension_numbers<[1], [0], [0], [1], [0, 0, 1, 1], [], []>} : vector<8x16xf32>, vector<16x96xf32>, vector<8x96xf32> -> vector<8x96xf32>
    %43 = vector.extract_strided_slice %42 {offsets = [0, 0], sizes = [8, 16], strides = [1, 1]} : vector<8x96xf32> to vector<8x16xf32>
    %44 = vector.extract_strided_slice %42 {offsets = [0, 16], sizes = [8, 16], strides = [1, 1]} : vector<8x96xf32> to vector<8x16xf32>
    %45 = vector.extract_strided_slice %42 {offsets = [0, 32], sizes = [8, 16], strides = [1, 1]} : vector<8x96xf32> to vector<8x16xf32>
    %46 = vector.extract_strided_slice %42 {offsets = [0, 48], sizes = [8, 16], strides = [1, 1]} : vector<8x96xf32> to vector<8x16xf32>
    %47 = vector.extract_strided_slice %42 {offsets = [0, 64], sizes = [8, 16], strides = [1, 1]} : vector<8x96xf32> to vector<8x16xf32>
    %48 = vector.extract_strided_slice %42 {offsets = [0, 80], sizes = [8, 16], strides = [1, 1]} : vector<8x96xf32> to vector<8x16xf32>
    %cst_21 = arith.constant dense<0.000000e+00> : vector<8x8xf32>
    %49 = tpu.matmul %46, %44, %cst_21 {dimension_numbers = #tpu.dot_dimension_numbers<[1], [1], [0], [0], [0, 0, 1, 0], [], []>} : vector<8x16xf32>, vector<8x16xf32>, vector<8x8xf32> -> vector<8x8xf32>
    %cst_22 = arith.constant dense<0xFF800000> : vector<8xf32>
    %50 = vector.multi_reduction <maximumf>, %49, %cst_22 [1] : vector<8x8xf32> to vector<8xf32>
    %51 = vector.shape_cast %50 : vector<8xf32> to vector<8x1xf32>
    %52 = vector.broadcast %51 : vector<8x1xf32> to vector<8x8xf32>
    %53 = arith.subf %49, %52 : vector<8x8xf32>
    %54 = math.exp %53 : vector<8x8xf32>
    %cst_23 = arith.constant dense<0.000000e+00> : vector<8xf32>
    %55 = vector.multi_reduction <add>, %54, %cst_23 [1] : vector<8x8xf32> to vector<8xf32>
    %56 = vector.shape_cast %55 : vector<8xf32> to vector<8x1xf32>
    %57 = tpu.reciprocal %56 {approx = true} : vector<8x1xf32> -> vector<8x1xf32>
    %58 = vector.broadcast %57 : vector<8x1xf32> to vector<8x8xf32>
    %59 = arith.mulf %54, %58 : vector<8x8xf32>
    %cst_24 = arith.constant dense<0.000000e+00> : vector<8x8xf32>
    %60 = tpu.matmul %43, %47, %cst_24 {dimension_numbers = #tpu.dot_dimension_numbers<[1], [1], [0], [0], [0, 0, 1, 0], [], []>} : vector<8x16xf32>, vector<8x16xf32>, vector<8x8xf32> -> vector<8x8xf32>
    %cst_25 = arith.constant dense<0xFF800000> : vector<8xf32>
    %61 = vector.multi_reduction <maximumf>, %60, %cst_25 [1] : vector<8x8xf32> to vector<8xf32>
    %62 = vector.shape_cast %61 : vector<8xf32> to vector<8x1xf32>
    %63 = vector.broadcast %62 : vector<8x1xf32> to vector<8x8xf32>
    %64 = arith.subf %60, %63 : vector<8x8xf32>
    %65 = math.exp %64 : vector<8x8xf32>
    %cst_26 = arith.constant dense<0.000000e+00> : vector<8xf32>
    %66 = vector.multi_reduction <add>, %65, %cst_26 [1] : vector<8x8xf32> to vector<8xf32>
    %67 = vector.shape_cast %66 : vector<8xf32> to vector<8x1xf32>
    %68 = tpu.reciprocal %67 {approx = true} : vector<8x1xf32> -> vector<8x1xf32>
    %69 = vector.broadcast %68 : vector<8x1xf32> to vector<8x8xf32>
    %70 = arith.mulf %65, %69 : vector<8x8xf32>
    %cst_27 = arith.constant dense<0.000000e+00> : vector<8x16xf32>
    %71 = tpu.matmul %59, %45, %cst_27 {dimension_numbers = #tpu.dot_dimension_numbers<[1], [0], [0], [1], [0, 0, 1, 1], [], []>} : vector<8x8xf32>, vector<8x16xf32>, vector<8x16xf32> -> vector<8x16xf32>
    %cst_28 = arith.constant dense<0.000000e+00> : vector<8x16xf32>
    %72 = tpu.matmul %70, %48, %cst_28 {dimension_numbers = #tpu.dot_dimension_numbers<[1], [0], [0], [1], [0, 0, 1, 1], [], []>} : vector<8x8xf32>, vector<8x16xf32>, vector<8x16xf32> -> vector<8x16xf32>
    %73 = tpu.concatenate %71, %72 in 1 : vector<8x16xf32>, vector<8x16xf32> -> vector<8x32xf32>
    %cst_29 = arith.constant dense<0.000000e+00> : vector<8x128xf32>
    %74 = tpu.matmul %73, %1, %cst_29 {dimension_numbers = #tpu.dot_dimension_numbers<[1], [0], [0], [1], [0, 0, 1, 1], [], []>} : vector<8x32xf32>, vector<32x128xf32>, vector<8x128xf32> -> vector<8x128xf32>
    %c1_30 = arith.constant 1 : index
    %c0_31 = arith.constant 0 : index
    %c0_32 = arith.constant 0 : index
    %75 = vector.load %arg4[%c1_30, %c0_31, %c0_32] : memref<2x8x128xf32, #tpu.memory_space<vmem>>, vector<1x8x128xf32>
    %76 = vector.shape_cast %75 : vector<1x8x128xf32> to vector<8x128xf32>
    %77 = vector.shape_cast %74 : vector<8x128xf32> to vector<1x8x128xf32>
    tpu.vector_store %arg4[%c1_30, %c0_31, %c0_32], %77 {strides = array<i32>} : memref<2x8x128xf32, #tpu.memory_space<vmem>>, vector<1x8x128xf32>,
    return
  }
  func.func @transform_0(%arg0: i32) -> (i32, i32, i32) {
    %c0_i32 = arith.constant 0 : i32
    %c0_i32_0 = arith.constant 0 : i32
    %c0_i32_1 = arith.constant 0 : i32
    %c0_i32_2 = arith.constant 0 : i32
    return %c0_i32, %c0_i32_0, %c0_i32_1 : i32, i32, i32
  }
  func.func @transform_1(%arg0: i32) -> (i32, i32) {
    %c0_i32 = arith.constant 0 : i32
    %c0_i32_0 = arith.constant 0 : i32
    %c0_i32_1 = arith.constant 0 : i32
    return %c0_i32, %c0_i32_0 : i32, i32
  }
  func.func @transform_2(%arg0: i32) -> (i32, i32) {
    %c0_i32 = arith.constant 0 : i32
    %c0_i32_0 = arith.constant 0 : i32
    %c0_i32_1 = arith.constant 0 : i32
    return %c0_i32, %c0_i32_0 : i32, i32
  }
  func.func @transform_3(%arg0: i32) -> (i32, i32, i32) {
    %c0_i32 = arith.constant 0 : i32
    %c0_i32_0 = arith.constant 0 : i32
    %c0_i32_1 = arith.constant 0 : i32
    %c0_i32_2 = arith.constant 0 : i32
    return %c0_i32, %c0_i32_0, %c0_i32_1 : i32, i32, i32
  }
}

module attributes {stable_mosaic.version = 11 : i64} {
  func.func @_grid_lstm_kernel(%arg0: i32, %arg1: memref<8x2x128xf32, #tpu.memory_space<vmem>>, %arg2: memref<64x128xf32, #tpu.memory_space<vmem>>, %arg3: memref<1x128xf32, #tpu.memory_space<vmem>>, %arg4: memref<64x128xf32, #tpu.memory_space<vmem>>, %arg5: memref<1x128xf32, #tpu.memory_space<vmem>>, %arg6: memref<32x16xf32, #tpu.memory_space<vmem>>, %arg7: memref<1x16xf32, #tpu.memory_space<vmem>>, %arg8: memref<32x16xf32, #tpu.memory_space<vmem>>, %arg9: memref<1x16xf32, #tpu.memory_space<vmem>>, %arg10: memref<16x16xf32, #tpu.memory_space<vmem>>, %arg11: memref<16x16xf32, #tpu.memory_space<vmem>>, %arg12: memref<2x32xf32, #tpu.memory_space<vmem>>, %arg13: memref<2x32xf32, #tpu.memory_space<vmem>>, %arg14: memref<2x32xf32, #tpu.memory_space<vmem>>, %arg15: memref<2x32xf32, #tpu.memory_space<vmem>>, %arg16: memref<16x32xf32, #tpu.memory_space<vmem>>, %arg17: memref<16x32xf32, #tpu.memory_space<vmem>>) attributes {dimension_semantics = [#tpu.dimension_semantics<arbitrary>], iteration_bounds = array<i64: 1>, scalar_prefetch = 0 : i64, scratch_operands = 6 : i64, tpu.core_type = #tpu.core_type<tc>, window_params = [{transform_indices = @transform_0, window_bounds = array<i64: 8, 2, 128>}, {pipeline_mode = #tpu.pipeline_mode<synchronous>, transform_indices = @transform_1, window_bounds = array<i64: 64, 128>}, {pipeline_mode = #tpu.pipeline_mode<synchronous>, transform_indices = @transform_2, window_bounds = array<i64: 1, 128>}, {pipeline_mode = #tpu.pipeline_mode<synchronous>, transform_indices = @transform_3, window_bounds = array<i64: 64, 128>}, {pipeline_mode = #tpu.pipeline_mode<synchronous>, transform_indices = @transform_4, window_bounds = array<i64: 1, 128>}, {pipeline_mode = #tpu.pipeline_mode<synchronous>, transform_indices = @transform_5, window_bounds = array<i64: 32, 16>}, {pipeline_mode = #tpu.pipeline_mode<synchronous>, transform_indices = @transform_6, window_bounds = array<i64: 1, 16>}, {pipeline_mode = #tpu.pipeline_mode<synchronous>, transform_indices = @transform_7, window_bounds = array<i64: 32, 16>}, {pipeline_mode = #tpu.pipeline_mode<synchronous>, transform_indices = @transform_8, window_bounds = array<i64: 1, 16>}, {transform_indices = @transform_9, window_bounds = array<i64: 16, 16>}, {transform_indices = @transform_10, window_bounds = array<i64: 16, 16>}]} {
    %c0_i32 = arith.constant 0 : i32
    %0 = arith.cmpi eq, %arg0, %c0_i32 : i32
    %1 = arith.extui %0 : i1 to i32
    %c0_i32_0 = arith.constant 0 : i32
    %2 = arith.cmpi ne, %1, %c0_i32_0 : i32
    scf.if %2 {
      %cst_150 = arith.constant 0.000000e+00 : f32
      %533 = vector.broadcast %cst_150 : f32 to vector<2x32xf32>
      %c0_151 = arith.constant 0 : index
      %c0_152 = arith.constant 0 : index
      %534 = vector.load %arg12[%c0_151, %c0_152] : memref<2x32xf32, #tpu.memory_space<vmem>>, vector<2x32xf32>
      tpu.vector_store %arg12[%c0_151, %c0_152], %533 {strides = array<i32>} : memref<2x32xf32, #tpu.memory_space<vmem>>, vector<2x32xf32>,
      %cst_153 = arith.constant 0.000000e+00 : f32
      %535 = vector.broadcast %cst_153 : f32 to vector<2x32xf32>
      %c0_154 = arith.constant 0 : index
      %c0_155 = arith.constant 0 : index
      %536 = vector.load %arg13[%c0_154, %c0_155] : memref<2x32xf32, #tpu.memory_space<vmem>>, vector<2x32xf32>
      tpu.vector_store %arg13[%c0_154, %c0_155], %535 {strides = array<i32>} : memref<2x32xf32, #tpu.memory_space<vmem>>, vector<2x32xf32>,
      %cst_156 = arith.constant 0.000000e+00 : f32
      %537 = vector.broadcast %cst_156 : f32 to vector<2x32xf32>
      %c0_157 = arith.constant 0 : index
      %c0_158 = arith.constant 0 : index
      %538 = vector.load %arg14[%c0_157, %c0_158] : memref<2x32xf32, #tpu.memory_space<vmem>>, vector<2x32xf32>
      tpu.vector_store %arg14[%c0_157, %c0_158], %537 {strides = array<i32>} : memref<2x32xf32, #tpu.memory_space<vmem>>, vector<2x32xf32>,
      %cst_159 = arith.constant 0.000000e+00 : f32
      %539 = vector.broadcast %cst_159 : f32 to vector<2x32xf32>
      %c0_160 = arith.constant 0 : index
      %c0_161 = arith.constant 0 : index
      %540 = vector.load %arg15[%c0_160, %c0_161] : memref<2x32xf32, #tpu.memory_space<vmem>>, vector<2x32xf32>
      tpu.vector_store %arg15[%c0_160, %c0_161], %539 {strides = array<i32>} : memref<2x32xf32, #tpu.memory_space<vmem>>, vector<2x32xf32>,
    } else {
    }
    %c0 = arith.constant 0 : index
    %c0_1 = arith.constant 0 : index
    %3 = vector.load %arg2[%c0, %c0_1] : memref<64x128xf32, #tpu.memory_space<vmem>>, vector<64x128xf32>
    %c0_2 = arith.constant 0 : index
    %c0_3 = arith.constant 0 : index
    %4 = vector.load %arg3[%c0_2, %c0_3] : memref<1x128xf32, #tpu.memory_space<vmem>>, vector<1x128xf32>
    %c0_4 = arith.constant 0 : index
    %c0_5 = arith.constant 0 : index
    %5 = vector.load %arg4[%c0_4, %c0_5] : memref<64x128xf32, #tpu.memory_space<vmem>>, vector<64x128xf32>
    %c0_6 = arith.constant 0 : index
    %c0_7 = arith.constant 0 : index
    %6 = vector.load %arg5[%c0_6, %c0_7] : memref<1x128xf32, #tpu.memory_space<vmem>>, vector<1x128xf32>
    %c0_8 = arith.constant 0 : index
    %c0_9 = arith.constant 0 : index
    %7 = vector.load %arg12[%c0_8, %c0_9] : memref<2x32xf32, #tpu.memory_space<vmem>>, vector<2x32xf32>
    %c0_10 = arith.constant 0 : index
    %c0_11 = arith.constant 0 : index
    %8 = vector.load %arg13[%c0_10, %c0_11] : memref<2x32xf32, #tpu.memory_space<vmem>>, vector<2x32xf32>
    %c0_12 = arith.constant 0 : index
    %c0_13 = arith.constant 0 : index
    %9 = vector.load %arg14[%c0_12, %c0_13] : memref<2x32xf32, #tpu.memory_space<vmem>>, vector<2x32xf32>
    %c0_14 = arith.constant 0 : index
    %c0_15 = arith.constant 0 : index
    %10 = vector.load %arg15[%c0_14, %c0_15] : memref<2x32xf32, #tpu.memory_space<vmem>>, vector<2x32xf32>
    %11 = tpu.concatenate %7, %9 in 1 : vector<2x32xf32>, vector<2x32xf32> -> vector<2x64xf32>
    %c0_16 = arith.constant 0 : index
    %c0_17 = arith.constant 0 : index
    %c0_18 = arith.constant 0 : index
    %12 = vector.load %arg1[%c0_16, %c0_17, %c0_18] : memref<8x2x128xf32, #tpu.memory_space<vmem>>, vector<1x2x128xf32>
    %13 = vector.shape_cast %12 : vector<1x2x128xf32> to vector<2x128xf32>
    %cst = arith.constant dense<0.000000e+00> : vector<2x128xf32>
    %14 = tpu.matmul %11, %3, %cst {dimension_numbers = #tpu.dot_dimension_numbers<[1], [0], [0], [1], [0, 0, 1, 1], [], []>} : vector<2x64xf32>, vector<64x128xf32>, vector<2x128xf32> -> vector<2x128xf32>
    %15 = arith.addf %13, %14 : vector<2x128xf32>
    %16 = vector.broadcast %4 : vector<1x128xf32> to vector<2x128xf32>
    %17 = arith.addf %15, %16 : vector<2x128xf32>
    %18 = vector.extract_strided_slice %17 {offsets = [0, 0], sizes = [2, 32], strides = [1, 1]} : vector<2x128xf32> to vector<2x32xf32>
    %19 = arith.negf %18 : vector<2x32xf32>
    %20 = math.exp %19 : vector<2x32xf32>
    %cst_19 = arith.constant 1.000000e+00 : f32
    %21 = vector.broadcast %cst_19 : f32 to vector<2x32xf32>
    %22 = arith.addf %21, %20 : vector<2x32xf32>
    %23 = arith.divf %21, %22 : vector<2x32xf32>
    %24 = vector.extract_strided_slice %17 {offsets = [0, 32], sizes = [2, 32], strides = [1, 1]} : vector<2x128xf32> to vector<2x32xf32>
    %25 = arith.negf %24 : vector<2x32xf32>
    %26 = math.exp %25 : vector<2x32xf32>
    %cst_20 = arith.constant 1.000000e+00 : f32
    %27 = vector.broadcast %cst_20 : f32 to vector<2x32xf32>
    %28 = arith.addf %27, %26 : vector<2x32xf32>
    %29 = arith.divf %27, %28 : vector<2x32xf32>
    %30 = vector.extract_strided_slice %17 {offsets = [0, 64], sizes = [2, 32], strides = [1, 1]} : vector<2x128xf32> to vector<2x32xf32>
    %31 = math.tanh %30 : vector<2x32xf32>
    %32 = vector.extract_strided_slice %17 {offsets = [0, 96], sizes = [2, 32], strides = [1, 1]} : vector<2x128xf32> to vector<2x32xf32>
    %33 = arith.negf %32 : vector<2x32xf32>
    %34 = math.exp %33 : vector<2x32xf32>
    %cst_21 = arith.constant 1.000000e+00 : f32
    %35 = vector.broadcast %cst_21 : f32 to vector<2x32xf32>
    %36 = arith.addf %35, %34 : vector<2x32xf32>
    %37 = arith.divf %35, %36 : vector<2x32xf32>
    %38 = arith.mulf %29, %8 : vector<2x32xf32>
    %39 = arith.mulf %23, %31 : vector<2x32xf32>
    %40 = arith.addf %38, %39 : vector<2x32xf32>
    %41 = math.tanh %40 : vector<2x32xf32>
    %42 = arith.mulf %37, %41 : vector<2x32xf32>
    %43 = tpu.concatenate %42, %9 in 1 : vector<2x32xf32>, vector<2x32xf32> -> vector<2x64xf32>
    %cst_22 = arith.constant dense<0.000000e+00> : vector<2x128xf32>
    %44 = tpu.matmul %43, %5, %cst_22 {dimension_numbers = #tpu.dot_dimension_numbers<[1], [0], [0], [1], [0, 0, 1, 1], [], []>} : vector<2x64xf32>, vector<64x128xf32>, vector<2x128xf32> -> vector<2x128xf32>
    %45 = vector.broadcast %6 : vector<1x128xf32> to vector<2x128xf32>
    %46 = arith.addf %44, %45 : vector<2x128xf32>
    %47 = vector.extract_strided_slice %46 {offsets = [0, 0], sizes = [2, 32], strides = [1, 1]} : vector<2x128xf32> to vector<2x32xf32>
    %48 = arith.negf %47 : vector<2x32xf32>
    %49 = math.exp %48 : vector<2x32xf32>
    %cst_23 = arith.constant 1.000000e+00 : f32
    %50 = vector.broadcast %cst_23 : f32 to vector<2x32xf32>
    %51 = arith.addf %50, %49 : vector<2x32xf32>
    %52 = arith.divf %50, %51 : vector<2x32xf32>
    %53 = vector.extract_strided_slice %46 {offsets = [0, 32], sizes = [2, 32], strides = [1, 1]} : vector<2x128xf32> to vector<2x32xf32>
    %54 = arith.negf %53 : vector<2x32xf32>
    %55 = math.exp %54 : vector<2x32xf32>
    %cst_24 = arith.constant 1.000000e+00 : f32
    %56 = vector.broadcast %cst_24 : f32 to vector<2x32xf32>
    %57 = arith.addf %56, %55 : vector<2x32xf32>
    %58 = arith.divf %56, %57 : vector<2x32xf32>
    %59 = vector.extract_strided_slice %46 {offsets = [0, 64], sizes = [2, 32], strides = [1, 1]} : vector<2x128xf32> to vector<2x32xf32>
    %60 = math.tanh %59 : vector<2x32xf32>
    %61 = vector.extract_strided_slice %46 {offsets = [0, 96], sizes = [2, 32], strides = [1, 1]} : vector<2x128xf32> to vector<2x32xf32>
    %62 = arith.negf %61 : vector<2x32xf32>
    %63 = math.exp %62 : vector<2x32xf32>
    %cst_25 = arith.constant 1.000000e+00 : f32
    %64 = vector.broadcast %cst_25 : f32 to vector<2x32xf32>
    %65 = arith.addf %64, %63 : vector<2x32xf32>
    %66 = arith.divf %64, %65 : vector<2x32xf32>
    %67 = arith.mulf %58, %10 : vector<2x32xf32>
    %68 = arith.mulf %52, %60 : vector<2x32xf32>
    %69 = arith.addf %67, %68 : vector<2x32xf32>
    %70 = math.tanh %69 : vector<2x32xf32>
    %71 = arith.mulf %66, %70 : vector<2x32xf32>
    %c0_26 = arith.constant 0 : index
    %c0_27 = arith.constant 0 : index
    %72 = vector.load %arg16[%c0_26, %c0_27] : memref<16x32xf32, #tpu.memory_space<vmem>>, vector<2x32xf32>
    tpu.vector_store %arg16[%c0_26, %c0_27], %42 {strides = array<i32>} : memref<16x32xf32, #tpu.memory_space<vmem>>, vector<2x32xf32>,
    %c0_28 = arith.constant 0 : index
    %c0_29 = arith.constant 0 : index
    %73 = vector.load %arg17[%c0_28, %c0_29] : memref<16x32xf32, #tpu.memory_space<vmem>>, vector<2x32xf32>
    tpu.vector_store %arg17[%c0_28, %c0_29], %71 {strides = array<i32>} : memref<16x32xf32, #tpu.memory_space<vmem>>, vector<2x32xf32>,
    %74 = tpu.concatenate %42, %71 in 1 : vector<2x32xf32>, vector<2x32xf32> -> vector<2x64xf32>
    %c1 = arith.constant 1 : index
    %c0_30 = arith.constant 0 : index
    %c0_31 = arith.constant 0 : index
    %75 = vector.load %arg1[%c1, %c0_30, %c0_31] : memref<8x2x128xf32, #tpu.memory_space<vmem>>, vector<1x2x128xf32>
    %76 = vector.shape_cast %75 : vector<1x2x128xf32> to vector<2x128xf32>
    %cst_32 = arith.constant dense<0.000000e+00> : vector<2x128xf32>
    %77 = tpu.matmul %74, %3, %cst_32 {dimension_numbers = #tpu.dot_dimension_numbers<[1], [0], [0], [1], [0, 0, 1, 1], [], []>} : vector<2x64xf32>, vector<64x128xf32>, vector<2x128xf32> -> vector<2x128xf32>
    %78 = arith.addf %76, %77 : vector<2x128xf32>
    %79 = vector.broadcast %4 : vector<1x128xf32> to vector<2x128xf32>
    %80 = arith.addf %78, %79 : vector<2x128xf32>
    %81 = vector.extract_strided_slice %80 {offsets = [0, 0], sizes = [2, 32], strides = [1, 1]} : vector<2x128xf32> to vector<2x32xf32>
    %82 = arith.negf %81 : vector<2x32xf32>
    %83 = math.exp %82 : vector<2x32xf32>
    %cst_33 = arith.constant 1.000000e+00 : f32
    %84 = vector.broadcast %cst_33 : f32 to vector<2x32xf32>
    %85 = arith.addf %84, %83 : vector<2x32xf32>
    %86 = arith.divf %84, %85 : vector<2x32xf32>
    %87 = vector.extract_strided_slice %80 {offsets = [0, 32], sizes = [2, 32], strides = [1, 1]} : vector<2x128xf32> to vector<2x32xf32>
    %88 = arith.negf %87 : vector<2x32xf32>
    %89 = math.exp %88 : vector<2x32xf32>
    %cst_34 = arith.constant 1.000000e+00 : f32
    %90 = vector.broadcast %cst_34 : f32 to vector<2x32xf32>
    %91 = arith.addf %90, %89 : vector<2x32xf32>
    %92 = arith.divf %90, %91 : vector<2x32xf32>
    %93 = vector.extract_strided_slice %80 {offsets = [0, 64], sizes = [2, 32], strides = [1, 1]} : vector<2x128xf32> to vector<2x32xf32>
    %94 = math.tanh %93 : vector<2x32xf32>
    %95 = vector.extract_strided_slice %80 {offsets = [0, 96], sizes = [2, 32], strides = [1, 1]} : vector<2x128xf32> to vector<2x32xf32>
    %96 = arith.negf %95 : vector<2x32xf32>
    %97 = math.exp %96 : vector<2x32xf32>
    %cst_35 = arith.constant 1.000000e+00 : f32
    %98 = vector.broadcast %cst_35 : f32 to vector<2x32xf32>
    %99 = arith.addf %98, %97 : vector<2x32xf32>
    %100 = arith.divf %98, %99 : vector<2x32xf32>
    %101 = arith.mulf %92, %40 : vector<2x32xf32>
    %102 = arith.mulf %86, %94 : vector<2x32xf32>
    %103 = arith.addf %101, %102 : vector<2x32xf32>
    %104 = math.tanh %103 : vector<2x32xf32>
    %105 = arith.mulf %100, %104 : vector<2x32xf32>
    %106 = tpu.concatenate %105, %71 in 1 : vector<2x32xf32>, vector<2x32xf32> -> vector<2x64xf32>
    %cst_36 = arith.constant dense<0.000000e+00> : vector<2x128xf32>
    %107 = tpu.matmul %106, %5, %cst_36 {dimension_numbers = #tpu.dot_dimension_numbers<[1], [0], [0], [1], [0, 0, 1, 1], [], []>} : vector<2x64xf32>, vector<64x128xf32>, vector<2x128xf32> -> vector<2x128xf32>
    %108 = vector.broadcast %6 : vector<1x128xf32> to vector<2x128xf32>
    %109 = arith.addf %107, %108 : vector<2x128xf32>
    %110 = vector.extract_strided_slice %109 {offsets = [0, 0], sizes = [2, 32], strides = [1, 1]} : vector<2x128xf32> to vector<2x32xf32>
    %111 = arith.negf %110 : vector<2x32xf32>
    %112 = math.exp %111 : vector<2x32xf32>
    %cst_37 = arith.constant 1.000000e+00 : f32
    %113 = vector.broadcast %cst_37 : f32 to vector<2x32xf32>
    %114 = arith.addf %113, %112 : vector<2x32xf32>
    %115 = arith.divf %113, %114 : vector<2x32xf32>
    %116 = vector.extract_strided_slice %109 {offsets = [0, 32], sizes = [2, 32], strides = [1, 1]} : vector<2x128xf32> to vector<2x32xf32>
    %117 = arith.negf %116 : vector<2x32xf32>
    %118 = math.exp %117 : vector<2x32xf32>
    %cst_38 = arith.constant 1.000000e+00 : f32
    %119 = vector.broadcast %cst_38 : f32 to vector<2x32xf32>
    %120 = arith.addf %119, %118 : vector<2x32xf32>
    %121 = arith.divf %119, %120 : vector<2x32xf32>
    %122 = vector.extract_strided_slice %109 {offsets = [0, 64], sizes = [2, 32], strides = [1, 1]} : vector<2x128xf32> to vector<2x32xf32>
    %123 = math.tanh %122 : vector<2x32xf32>
    %124 = vector.extract_strided_slice %109 {offsets = [0, 96], sizes = [2, 32], strides = [1, 1]} : vector<2x128xf32> to vector<2x32xf32>
    %125 = arith.negf %124 : vector<2x32xf32>
    %126 = math.exp %125 : vector<2x32xf32>
    %cst_39 = arith.constant 1.000000e+00 : f32
    %127 = vector.broadcast %cst_39 : f32 to vector<2x32xf32>
    %128 = arith.addf %127, %126 : vector<2x32xf32>
    %129 = arith.divf %127, %128 : vector<2x32xf32>
    %130 = arith.mulf %121, %69 : vector<2x32xf32>
    %131 = arith.mulf %115, %123 : vector<2x32xf32>
    %132 = arith.addf %130, %131 : vector<2x32xf32>
    %133 = math.tanh %132 : vector<2x32xf32>
    %134 = arith.mulf %129, %133 : vector<2x32xf32>
    %c2 = arith.constant 2 : index
    %c0_40 = arith.constant 0 : index
    %135 = vector.load %arg16[%c2, %c0_40] : memref<16x32xf32, #tpu.memory_space<vmem>>, vector<2x32xf32>
    tpu.vector_store %arg16[%c2, %c0_40], %105 {strides = array<i32>} : memref<16x32xf32, #tpu.memory_space<vmem>>, vector<2x32xf32>,
    %c2_41 = arith.constant 2 : index
    %c0_42 = arith.constant 0 : index
    %136 = vector.load %arg17[%c2_41, %c0_42] : memref<16x32xf32, #tpu.memory_space<vmem>>, vector<2x32xf32>
    tpu.vector_store %arg17[%c2_41, %c0_42], %134 {strides = array<i32>} : memref<16x32xf32, #tpu.memory_space<vmem>>, vector<2x32xf32>,
    %137 = tpu.concatenate %105, %134 in 1 : vector<2x32xf32>, vector<2x32xf32> -> vector<2x64xf32>
    %c2_43 = arith.constant 2 : index
    %c0_44 = arith.constant 0 : index
    %c0_45 = arith.constant 0 : index
    %138 = vector.load %arg1[%c2_43, %c0_44, %c0_45] : memref<8x2x128xf32, #tpu.memory_space<vmem>>, vector<1x2x128xf32>
    %139 = vector.shape_cast %138 : vector<1x2x128xf32> to vector<2x128xf32>
    %cst_46 = arith.constant dense<0.000000e+00> : vector<2x128xf32>
    %140 = tpu.matmul %137, %3, %cst_46 {dimension_numbers = #tpu.dot_dimension_numbers<[1], [0], [0], [1], [0, 0, 1, 1], [], []>} : vector<2x64xf32>, vector<64x128xf32>, vector<2x128xf32> -> vector<2x128xf32>
    %141 = arith.addf %139, %140 : vector<2x128xf32>
    %142 = vector.broadcast %4 : vector<1x128xf32> to vector<2x128xf32>
    %143 = arith.addf %141, %142 : vector<2x128xf32>
    %144 = vector.extract_strided_slice %143 {offsets = [0, 0], sizes = [2, 32], strides = [1, 1]} : vector<2x128xf32> to vector<2x32xf32>
    %145 = arith.negf %144 : vector<2x32xf32>
    %146 = math.exp %145 : vector<2x32xf32>
    %cst_47 = arith.constant 1.000000e+00 : f32
    %147 = vector.broadcast %cst_47 : f32 to vector<2x32xf32>
    %148 = arith.addf %147, %146 : vector<2x32xf32>
    %149 = arith.divf %147, %148 : vector<2x32xf32>
    %150 = vector.extract_strided_slice %143 {offsets = [0, 32], sizes = [2, 32], strides = [1, 1]} : vector<2x128xf32> to vector<2x32xf32>
    %151 = arith.negf %150 : vector<2x32xf32>
    %152 = math.exp %151 : vector<2x32xf32>
    %cst_48 = arith.constant 1.000000e+00 : f32
    %153 = vector.broadcast %cst_48 : f32 to vector<2x32xf32>
    %154 = arith.addf %153, %152 : vector<2x32xf32>
    %155 = arith.divf %153, %154 : vector<2x32xf32>
    %156 = vector.extract_strided_slice %143 {offsets = [0, 64], sizes = [2, 32], strides = [1, 1]} : vector<2x128xf32> to vector<2x32xf32>
    %157 = math.tanh %156 : vector<2x32xf32>
    %158 = vector.extract_strided_slice %143 {offsets = [0, 96], sizes = [2, 32], strides = [1, 1]} : vector<2x128xf32> to vector<2x32xf32>
    %159 = arith.negf %158 : vector<2x32xf32>
    %160 = math.exp %159 : vector<2x32xf32>
    %cst_49 = arith.constant 1.000000e+00 : f32
    %161 = vector.broadcast %cst_49 : f32 to vector<2x32xf32>
    %162 = arith.addf %161, %160 : vector<2x32xf32>
    %163 = arith.divf %161, %162 : vector<2x32xf32>
    %164 = arith.mulf %155, %103 : vector<2x32xf32>
    %165 = arith.mulf %149, %157 : vector<2x32xf32>
    %166 = arith.addf %164, %165 : vector<2x32xf32>
    %167 = math.tanh %166 : vector<2x32xf32>
    %168 = arith.mulf %163, %167 : vector<2x32xf32>
    %169 = tpu.concatenate %168, %134 in 1 : vector<2x32xf32>, vector<2x32xf32> -> vector<2x64xf32>
    %cst_50 = arith.constant dense<0.000000e+00> : vector<2x128xf32>
    %170 = tpu.matmul %169, %5, %cst_50 {dimension_numbers = #tpu.dot_dimension_numbers<[1], [0], [0], [1], [0, 0, 1, 1], [], []>} : vector<2x64xf32>, vector<64x128xf32>, vector<2x128xf32> -> vector<2x128xf32>
    %171 = vector.broadcast %6 : vector<1x128xf32> to vector<2x128xf32>
    %172 = arith.addf %170, %171 : vector<2x128xf32>
    %173 = vector.extract_strided_slice %172 {offsets = [0, 0], sizes = [2, 32], strides = [1, 1]} : vector<2x128xf32> to vector<2x32xf32>
    %174 = arith.negf %173 : vector<2x32xf32>
    %175 = math.exp %174 : vector<2x32xf32>
    %cst_51 = arith.constant 1.000000e+00 : f32
    %176 = vector.broadcast %cst_51 : f32 to vector<2x32xf32>
    %177 = arith.addf %176, %175 : vector<2x32xf32>
    %178 = arith.divf %176, %177 : vector<2x32xf32>
    %179 = vector.extract_strided_slice %172 {offsets = [0, 32], sizes = [2, 32], strides = [1, 1]} : vector<2x128xf32> to vector<2x32xf32>
    %180 = arith.negf %179 : vector<2x32xf32>
    %181 = math.exp %180 : vector<2x32xf32>
    %cst_52 = arith.constant 1.000000e+00 : f32
    %182 = vector.broadcast %cst_52 : f32 to vector<2x32xf32>
    %183 = arith.addf %182, %181 : vector<2x32xf32>
    %184 = arith.divf %182, %183 : vector<2x32xf32>
    %185 = vector.extract_strided_slice %172 {offsets = [0, 64], sizes = [2, 32], strides = [1, 1]} : vector<2x128xf32> to vector<2x32xf32>
    %186 = math.tanh %185 : vector<2x32xf32>
    %187 = vector.extract_strided_slice %172 {offsets = [0, 96], sizes = [2, 32], strides = [1, 1]} : vector<2x128xf32> to vector<2x32xf32>
    %188 = arith.negf %187 : vector<2x32xf32>
    %189 = math.exp %188 : vector<2x32xf32>
    %cst_53 = arith.constant 1.000000e+00 : f32
    %190 = vector.broadcast %cst_53 : f32 to vector<2x32xf32>
    %191 = arith.addf %190, %189 : vector<2x32xf32>
    %192 = arith.divf %190, %191 : vector<2x32xf32>
    %193 = arith.mulf %184, %132 : vector<2x32xf32>
    %194 = arith.mulf %178, %186 : vector<2x32xf32>
    %195 = arith.addf %193, %194 : vector<2x32xf32>
    %196 = math.tanh %195 : vector<2x32xf32>
    %197 = arith.mulf %192, %196 : vector<2x32xf32>
    %c4 = arith.constant 4 : index
    %c0_54 = arith.constant 0 : index
    %198 = vector.load %arg16[%c4, %c0_54] : memref<16x32xf32, #tpu.memory_space<vmem>>, vector<2x32xf32>
    tpu.vector_store %arg16[%c4, %c0_54], %168 {strides = array<i32>} : memref<16x32xf32, #tpu.memory_space<vmem>>, vector<2x32xf32>,
    %c4_55 = arith.constant 4 : index
    %c0_56 = arith.constant 0 : index
    %199 = vector.load %arg17[%c4_55, %c0_56] : memref<16x32xf32, #tpu.memory_space<vmem>>, vector<2x32xf32>
    tpu.vector_store %arg17[%c4_55, %c0_56], %197 {strides = array<i32>} : memref<16x32xf32, #tpu.memory_space<vmem>>, vector<2x32xf32>,
    %200 = tpu.concatenate %168, %197 in 1 : vector<2x32xf32>, vector<2x32xf32> -> vector<2x64xf32>
    %c3 = arith.constant 3 : index
    %c0_57 = arith.constant 0 : index
    %c0_58 = arith.constant 0 : index
    %201 = vector.load %arg1[%c3, %c0_57, %c0_58] : memref<8x2x128xf32, #tpu.memory_space<vmem>>, vector<1x2x128xf32>
    %202 = vector.shape_cast %201 : vector<1x2x128xf32> to vector<2x128xf32>
    %cst_59 = arith.constant dense<0.000000e+00> : vector<2x128xf32>
    %203 = tpu.matmul %200, %3, %cst_59 {dimension_numbers = #tpu.dot_dimension_numbers<[1], [0], [0], [1], [0, 0, 1, 1], [], []>} : vector<2x64xf32>, vector<64x128xf32>, vector<2x128xf32> -> vector<2x128xf32>
    %204 = arith.addf %202, %203 : vector<2x128xf32>
    %205 = vector.broadcast %4 : vector<1x128xf32> to vector<2x128xf32>
    %206 = arith.addf %204, %205 : vector<2x128xf32>
    %207 = vector.extract_strided_slice %206 {offsets = [0, 0], sizes = [2, 32], strides = [1, 1]} : vector<2x128xf32> to vector<2x32xf32>
    %208 = arith.negf %207 : vector<2x32xf32>
    %209 = math.exp %208 : vector<2x32xf32>
    %cst_60 = arith.constant 1.000000e+00 : f32
    %210 = vector.broadcast %cst_60 : f32 to vector<2x32xf32>
    %211 = arith.addf %210, %209 : vector<2x32xf32>
    %212 = arith.divf %210, %211 : vector<2x32xf32>
    %213 = vector.extract_strided_slice %206 {offsets = [0, 32], sizes = [2, 32], strides = [1, 1]} : vector<2x128xf32> to vector<2x32xf32>
    %214 = arith.negf %213 : vector<2x32xf32>
    %215 = math.exp %214 : vector<2x32xf32>
    %cst_61 = arith.constant 1.000000e+00 : f32
    %216 = vector.broadcast %cst_61 : f32 to vector<2x32xf32>
    %217 = arith.addf %216, %215 : vector<2x32xf32>
    %218 = arith.divf %216, %217 : vector<2x32xf32>
    %219 = vector.extract_strided_slice %206 {offsets = [0, 64], sizes = [2, 32], strides = [1, 1]} : vector<2x128xf32> to vector<2x32xf32>
    %220 = math.tanh %219 : vector<2x32xf32>
    %221 = vector.extract_strided_slice %206 {offsets = [0, 96], sizes = [2, 32], strides = [1, 1]} : vector<2x128xf32> to vector<2x32xf32>
    %222 = arith.negf %221 : vector<2x32xf32>
    %223 = math.exp %222 : vector<2x32xf32>
    %cst_62 = arith.constant 1.000000e+00 : f32
    %224 = vector.broadcast %cst_62 : f32 to vector<2x32xf32>
    %225 = arith.addf %224, %223 : vector<2x32xf32>
    %226 = arith.divf %224, %225 : vector<2x32xf32>
    %227 = arith.mulf %218, %166 : vector<2x32xf32>
    %228 = arith.mulf %212, %220 : vector<2x32xf32>
    %229 = arith.addf %227, %228 : vector<2x32xf32>
    %230 = math.tanh %229 : vector<2x32xf32>
    %231 = arith.mulf %226, %230 : vector<2x32xf32>
    %232 = tpu.concatenate %231, %197 in 1 : vector<2x32xf32>, vector<2x32xf32> -> vector<2x64xf32>
    %cst_63 = arith.constant dense<0.000000e+00> : vector<2x128xf32>
    %233 = tpu.matmul %232, %5, %cst_63 {dimension_numbers = #tpu.dot_dimension_numbers<[1], [0], [0], [1], [0, 0, 1, 1], [], []>} : vector<2x64xf32>, vector<64x128xf32>, vector<2x128xf32> -> vector<2x128xf32>
    %234 = vector.broadcast %6 : vector<1x128xf32> to vector<2x128xf32>
    %235 = arith.addf %233, %234 : vector<2x128xf32>
    %236 = vector.extract_strided_slice %235 {offsets = [0, 0], sizes = [2, 32], strides = [1, 1]} : vector<2x128xf32> to vector<2x32xf32>
    %237 = arith.negf %236 : vector<2x32xf32>
    %238 = math.exp %237 : vector<2x32xf32>
    %cst_64 = arith.constant 1.000000e+00 : f32
    %239 = vector.broadcast %cst_64 : f32 to vector<2x32xf32>
    %240 = arith.addf %239, %238 : vector<2x32xf32>
    %241 = arith.divf %239, %240 : vector<2x32xf32>
    %242 = vector.extract_strided_slice %235 {offsets = [0, 32], sizes = [2, 32], strides = [1, 1]} : vector<2x128xf32> to vector<2x32xf32>
    %243 = arith.negf %242 : vector<2x32xf32>
    %244 = math.exp %243 : vector<2x32xf32>
    %cst_65 = arith.constant 1.000000e+00 : f32
    %245 = vector.broadcast %cst_65 : f32 to vector<2x32xf32>
    %246 = arith.addf %245, %244 : vector<2x32xf32>
    %247 = arith.divf %245, %246 : vector<2x32xf32>
    %248 = vector.extract_strided_slice %235 {offsets = [0, 64], sizes = [2, 32], strides = [1, 1]} : vector<2x128xf32> to vector<2x32xf32>
    %249 = math.tanh %248 : vector<2x32xf32>
    %250 = vector.extract_strided_slice %235 {offsets = [0, 96], sizes = [2, 32], strides = [1, 1]} : vector<2x128xf32> to vector<2x32xf32>
    %251 = arith.negf %250 : vector<2x32xf32>
    %252 = math.exp %251 : vector<2x32xf32>
    %cst_66 = arith.constant 1.000000e+00 : f32
    %253 = vector.broadcast %cst_66 : f32 to vector<2x32xf32>
    %254 = arith.addf %253, %252 : vector<2x32xf32>
    %255 = arith.divf %253, %254 : vector<2x32xf32>
    %256 = arith.mulf %247, %195 : vector<2x32xf32>
    %257 = arith.mulf %241, %249 : vector<2x32xf32>
    %258 = arith.addf %256, %257 : vector<2x32xf32>
    %259 = math.tanh %258 : vector<2x32xf32>
    %260 = arith.mulf %255, %259 : vector<2x32xf32>
    %c6 = arith.constant 6 : index
    %c0_67 = arith.constant 0 : index
    %261 = vector.load %arg16[%c6, %c0_67] : memref<16x32xf32, #tpu.memory_space<vmem>>, vector<2x32xf32>
    tpu.vector_store %arg16[%c6, %c0_67], %231 {strides = array<i32>} : memref<16x32xf32, #tpu.memory_space<vmem>>, vector<2x32xf32>,
    %c6_68 = arith.constant 6 : index
    %c0_69 = arith.constant 0 : index
    %262 = vector.load %arg17[%c6_68, %c0_69] : memref<16x32xf32, #tpu.memory_space<vmem>>, vector<2x32xf32>
    tpu.vector_store %arg17[%c6_68, %c0_69], %260 {strides = array<i32>} : memref<16x32xf32, #tpu.memory_space<vmem>>, vector<2x32xf32>,
    %263 = tpu.concatenate %231, %260 in 1 : vector<2x32xf32>, vector<2x32xf32> -> vector<2x64xf32>
    %c4_70 = arith.constant 4 : index
    %c0_71 = arith.constant 0 : index
    %c0_72 = arith.constant 0 : index
    %264 = vector.load %arg1[%c4_70, %c0_71, %c0_72] : memref<8x2x128xf32, #tpu.memory_space<vmem>>, vector<1x2x128xf32>
    %265 = vector.shape_cast %264 : vector<1x2x128xf32> to vector<2x128xf32>
    %cst_73 = arith.constant dense<0.000000e+00> : vector<2x128xf32>
    %266 = tpu.matmul %263, %3, %cst_73 {dimension_numbers = #tpu.dot_dimension_numbers<[1], [0], [0], [1], [0, 0, 1, 1], [], []>} : vector<2x64xf32>, vector<64x128xf32>, vector<2x128xf32> -> vector<2x128xf32>
    %267 = arith.addf %265, %266 : vector<2x128xf32>
    %268 = vector.broadcast %4 : vector<1x128xf32> to vector<2x128xf32>
    %269 = arith.addf %267, %268 : vector<2x128xf32>
    %270 = vector.extract_strided_slice %269 {offsets = [0, 0], sizes = [2, 32], strides = [1, 1]} : vector<2x128xf32> to vector<2x32xf32>
    %271 = arith.negf %270 : vector<2x32xf32>
    %272 = math.exp %271 : vector<2x32xf32>
    %cst_74 = arith.constant 1.000000e+00 : f32
    %273 = vector.broadcast %cst_74 : f32 to vector<2x32xf32>
    %274 = arith.addf %273, %272 : vector<2x32xf32>
    %275 = arith.divf %273, %274 : vector<2x32xf32>
    %276 = vector.extract_strided_slice %269 {offsets = [0, 32], sizes = [2, 32], strides = [1, 1]} : vector<2x128xf32> to vector<2x32xf32>
    %277 = arith.negf %276 : vector<2x32xf32>
    %278 = math.exp %277 : vector<2x32xf32>
    %cst_75 = arith.constant 1.000000e+00 : f32
    %279 = vector.broadcast %cst_75 : f32 to vector<2x32xf32>
    %280 = arith.addf %279, %278 : vector<2x32xf32>
    %281 = arith.divf %279, %280 : vector<2x32xf32>
    %282 = vector.extract_strided_slice %269 {offsets = [0, 64], sizes = [2, 32], strides = [1, 1]} : vector<2x128xf32> to vector<2x32xf32>
    %283 = math.tanh %282 : vector<2x32xf32>
    %284 = vector.extract_strided_slice %269 {offsets = [0, 96], sizes = [2, 32], strides = [1, 1]} : vector<2x128xf32> to vector<2x32xf32>
    %285 = arith.negf %284 : vector<2x32xf32>
    %286 = math.exp %285 : vector<2x32xf32>
    %cst_76 = arith.constant 1.000000e+00 : f32
    %287 = vector.broadcast %cst_76 : f32 to vector<2x32xf32>
    %288 = arith.addf %287, %286 : vector<2x32xf32>
    %289 = arith.divf %287, %288 : vector<2x32xf32>
    %290 = arith.mulf %281, %229 : vector<2x32xf32>
    %291 = arith.mulf %275, %283 : vector<2x32xf32>
    %292 = arith.addf %290, %291 : vector<2x32xf32>
    %293 = math.tanh %292 : vector<2x32xf32>
    %294 = arith.mulf %289, %293 : vector<2x32xf32>
    %295 = tpu.concatenate %294, %260 in 1 : vector<2x32xf32>, vector<2x32xf32> -> vector<2x64xf32>
    %cst_77 = arith.constant dense<0.000000e+00> : vector<2x128xf32>
    %296 = tpu.matmul %295, %5, %cst_77 {dimension_numbers = #tpu.dot_dimension_numbers<[1], [0], [0], [1], [0, 0, 1, 1], [], []>} : vector<2x64xf32>, vector<64x128xf32>, vector<2x128xf32> -> vector<2x128xf32>
    %297 = vector.broadcast %6 : vector<1x128xf32> to vector<2x128xf32>
    %298 = arith.addf %296, %297 : vector<2x128xf32>
    %299 = vector.extract_strided_slice %298 {offsets = [0, 0], sizes = [2, 32], strides = [1, 1]} : vector<2x128xf32> to vector<2x32xf32>
    %300 = arith.negf %299 : vector<2x32xf32>
    %301 = math.exp %300 : vector<2x32xf32>
    %cst_78 = arith.constant 1.000000e+00 : f32
    %302 = vector.broadcast %cst_78 : f32 to vector<2x32xf32>
    %303 = arith.addf %302, %301 : vector<2x32xf32>
    %304 = arith.divf %302, %303 : vector<2x32xf32>
    %305 = vector.extract_strided_slice %298 {offsets = [0, 32], sizes = [2, 32], strides = [1, 1]} : vector<2x128xf32> to vector<2x32xf32>
    %306 = arith.negf %305 : vector<2x32xf32>
    %307 = math.exp %306 : vector<2x32xf32>
    %cst_79 = arith.constant 1.000000e+00 : f32
    %308 = vector.broadcast %cst_79 : f32 to vector<2x32xf32>
    %309 = arith.addf %308, %307 : vector<2x32xf32>
    %310 = arith.divf %308, %309 : vector<2x32xf32>
    %311 = vector.extract_strided_slice %298 {offsets = [0, 64], sizes = [2, 32], strides = [1, 1]} : vector<2x128xf32> to vector<2x32xf32>
    %312 = math.tanh %311 : vector<2x32xf32>
    %313 = vector.extract_strided_slice %298 {offsets = [0, 96], sizes = [2, 32], strides = [1, 1]} : vector<2x128xf32> to vector<2x32xf32>
    %314 = arith.negf %313 : vector<2x32xf32>
    %315 = math.exp %314 : vector<2x32xf32>
    %cst_80 = arith.constant 1.000000e+00 : f32
    %316 = vector.broadcast %cst_80 : f32 to vector<2x32xf32>
    %317 = arith.addf %316, %315 : vector<2x32xf32>
    %318 = arith.divf %316, %317 : vector<2x32xf32>
    %319 = arith.mulf %310, %258 : vector<2x32xf32>
    %320 = arith.mulf %304, %312 : vector<2x32xf32>
    %321 = arith.addf %319, %320 : vector<2x32xf32>
    %322 = math.tanh %321 : vector<2x32xf32>
    %323 = arith.mulf %318, %322 : vector<2x32xf32>
    %c8 = arith.constant 8 : index
    %c0_81 = arith.constant 0 : index
    %324 = vector.load %arg16[%c8, %c0_81] : memref<16x32xf32, #tpu.memory_space<vmem>>, vector<2x32xf32>
    tpu.vector_store %arg16[%c8, %c0_81], %294 {strides = array<i32>} : memref<16x32xf32, #tpu.memory_space<vmem>>, vector<2x32xf32>,
    %c8_82 = arith.constant 8 : index
    %c0_83 = arith.constant 0 : index
    %325 = vector.load %arg17[%c8_82, %c0_83] : memref<16x32xf32, #tpu.memory_space<vmem>>, vector<2x32xf32>
    tpu.vector_store %arg17[%c8_82, %c0_83], %323 {strides = array<i32>} : memref<16x32xf32, #tpu.memory_space<vmem>>, vector<2x32xf32>,
    %326 = tpu.concatenate %294, %323 in 1 : vector<2x32xf32>, vector<2x32xf32> -> vector<2x64xf32>
    %c5 = arith.constant 5 : index
    %c0_84 = arith.constant 0 : index
    %c0_85 = arith.constant 0 : index
    %327 = vector.load %arg1[%c5, %c0_84, %c0_85] : memref<8x2x128xf32, #tpu.memory_space<vmem>>, vector<1x2x128xf32>
    %328 = vector.shape_cast %327 : vector<1x2x128xf32> to vector<2x128xf32>
    %cst_86 = arith.constant dense<0.000000e+00> : vector<2x128xf32>
    %329 = tpu.matmul %326, %3, %cst_86 {dimension_numbers = #tpu.dot_dimension_numbers<[1], [0], [0], [1], [0, 0, 1, 1], [], []>} : vector<2x64xf32>, vector<64x128xf32>, vector<2x128xf32> -> vector<2x128xf32>
    %330 = arith.addf %328, %329 : vector<2x128xf32>
    %331 = vector.broadcast %4 : vector<1x128xf32> to vector<2x128xf32>
    %332 = arith.addf %330, %331 : vector<2x128xf32>
    %333 = vector.extract_strided_slice %332 {offsets = [0, 0], sizes = [2, 32], strides = [1, 1]} : vector<2x128xf32> to vector<2x32xf32>
    %334 = arith.negf %333 : vector<2x32xf32>
    %335 = math.exp %334 : vector<2x32xf32>
    %cst_87 = arith.constant 1.000000e+00 : f32
    %336 = vector.broadcast %cst_87 : f32 to vector<2x32xf32>
    %337 = arith.addf %336, %335 : vector<2x32xf32>
    %338 = arith.divf %336, %337 : vector<2x32xf32>
    %339 = vector.extract_strided_slice %332 {offsets = [0, 32], sizes = [2, 32], strides = [1, 1]} : vector<2x128xf32> to vector<2x32xf32>
    %340 = arith.negf %339 : vector<2x32xf32>
    %341 = math.exp %340 : vector<2x32xf32>
    %cst_88 = arith.constant 1.000000e+00 : f32
    %342 = vector.broadcast %cst_88 : f32 to vector<2x32xf32>
    %343 = arith.addf %342, %341 : vector<2x32xf32>
    %344 = arith.divf %342, %343 : vector<2x32xf32>
    %345 = vector.extract_strided_slice %332 {offsets = [0, 64], sizes = [2, 32], strides = [1, 1]} : vector<2x128xf32> to vector<2x32xf32>
    %346 = math.tanh %345 : vector<2x32xf32>
    %347 = vector.extract_strided_slice %332 {offsets = [0, 96], sizes = [2, 32], strides = [1, 1]} : vector<2x128xf32> to vector<2x32xf32>
    %348 = arith.negf %347 : vector<2x32xf32>
    %349 = math.exp %348 : vector<2x32xf32>
    %cst_89 = arith.constant 1.000000e+00 : f32
    %350 = vector.broadcast %cst_89 : f32 to vector<2x32xf32>
    %351 = arith.addf %350, %349 : vector<2x32xf32>
    %352 = arith.divf %350, %351 : vector<2x32xf32>
    %353 = arith.mulf %344, %292 : vector<2x32xf32>
    %354 = arith.mulf %338, %346 : vector<2x32xf32>
    %355 = arith.addf %353, %354 : vector<2x32xf32>
    %356 = math.tanh %355 : vector<2x32xf32>
    %357 = arith.mulf %352, %356 : vector<2x32xf32>
    %358 = tpu.concatenate %357, %323 in 1 : vector<2x32xf32>, vector<2x32xf32> -> vector<2x64xf32>
    %cst_90 = arith.constant dense<0.000000e+00> : vector<2x128xf32>
    %359 = tpu.matmul %358, %5, %cst_90 {dimension_numbers = #tpu.dot_dimension_numbers<[1], [0], [0], [1], [0, 0, 1, 1], [], []>} : vector<2x64xf32>, vector<64x128xf32>, vector<2x128xf32> -> vector<2x128xf32>
    %360 = vector.broadcast %6 : vector<1x128xf32> to vector<2x128xf32>
    %361 = arith.addf %359, %360 : vector<2x128xf32>
    %362 = vector.extract_strided_slice %361 {offsets = [0, 0], sizes = [2, 32], strides = [1, 1]} : vector<2x128xf32> to vector<2x32xf32>
    %363 = arith.negf %362 : vector<2x32xf32>
    %364 = math.exp %363 : vector<2x32xf32>
    %cst_91 = arith.constant 1.000000e+00 : f32
    %365 = vector.broadcast %cst_91 : f32 to vector<2x32xf32>
    %366 = arith.addf %365, %364 : vector<2x32xf32>
    %367 = arith.divf %365, %366 : vector<2x32xf32>
    %368 = vector.extract_strided_slice %361 {offsets = [0, 32], sizes = [2, 32], strides = [1, 1]} : vector<2x128xf32> to vector<2x32xf32>
    %369 = arith.negf %368 : vector<2x32xf32>
    %370 = math.exp %369 : vector<2x32xf32>
    %cst_92 = arith.constant 1.000000e+00 : f32
    %371 = vector.broadcast %cst_92 : f32 to vector<2x32xf32>
    %372 = arith.addf %371, %370 : vector<2x32xf32>
    %373 = arith.divf %371, %372 : vector<2x32xf32>
    %374 = vector.extract_strided_slice %361 {offsets = [0, 64], sizes = [2, 32], strides = [1, 1]} : vector<2x128xf32> to vector<2x32xf32>
    %375 = math.tanh %374 : vector<2x32xf32>
    %376 = vector.extract_strided_slice %361 {offsets = [0, 96], sizes = [2, 32], strides = [1, 1]} : vector<2x128xf32> to vector<2x32xf32>
    %377 = arith.negf %376 : vector<2x32xf32>
    %378 = math.exp %377 : vector<2x32xf32>
    %cst_93 = arith.constant 1.000000e+00 : f32
    %379 = vector.broadcast %cst_93 : f32 to vector<2x32xf32>
    %380 = arith.addf %379, %378 : vector<2x32xf32>
    %381 = arith.divf %379, %380 : vector<2x32xf32>
    %382 = arith.mulf %373, %321 : vector<2x32xf32>
    %383 = arith.mulf %367, %375 : vector<2x32xf32>
    %384 = arith.addf %382, %383 : vector<2x32xf32>
    %385 = math.tanh %384 : vector<2x32xf32>
    %386 = arith.mulf %381, %385 : vector<2x32xf32>
    %c10 = arith.constant 10 : index
    %c0_94 = arith.constant 0 : index
    %387 = vector.load %arg16[%c10, %c0_94] : memref<16x32xf32, #tpu.memory_space<vmem>>, vector<2x32xf32>
    tpu.vector_store %arg16[%c10, %c0_94], %357 {strides = array<i32>} : memref<16x32xf32, #tpu.memory_space<vmem>>, vector<2x32xf32>,
    %c10_95 = arith.constant 10 : index
    %c0_96 = arith.constant 0 : index
    %388 = vector.load %arg17[%c10_95, %c0_96] : memref<16x32xf32, #tpu.memory_space<vmem>>, vector<2x32xf32>
    tpu.vector_store %arg17[%c10_95, %c0_96], %386 {strides = array<i32>} : memref<16x32xf32, #tpu.memory_space<vmem>>, vector<2x32xf32>,
    %389 = tpu.concatenate %357, %386 in 1 : vector<2x32xf32>, vector<2x32xf32> -> vector<2x64xf32>
    %c6_97 = arith.constant 6 : index
    %c0_98 = arith.constant 0 : index
    %c0_99 = arith.constant 0 : index
    %390 = vector.load %arg1[%c6_97, %c0_98, %c0_99] : memref<8x2x128xf32, #tpu.memory_space<vmem>>, vector<1x2x128xf32>
    %391 = vector.shape_cast %390 : vector<1x2x128xf32> to vector<2x128xf32>
    %cst_100 = arith.constant dense<0.000000e+00> : vector<2x128xf32>
    %392 = tpu.matmul %389, %3, %cst_100 {dimension_numbers = #tpu.dot_dimension_numbers<[1], [0], [0], [1], [0, 0, 1, 1], [], []>} : vector<2x64xf32>, vector<64x128xf32>, vector<2x128xf32> -> vector<2x128xf32>
    %393 = arith.addf %391, %392 : vector<2x128xf32>
    %394 = vector.broadcast %4 : vector<1x128xf32> to vector<2x128xf32>
    %395 = arith.addf %393, %394 : vector<2x128xf32>
    %396 = vector.extract_strided_slice %395 {offsets = [0, 0], sizes = [2, 32], strides = [1, 1]} : vector<2x128xf32> to vector<2x32xf32>
    %397 = arith.negf %396 : vector<2x32xf32>
    %398 = math.exp %397 : vector<2x32xf32>
    %cst_101 = arith.constant 1.000000e+00 : f32
    %399 = vector.broadcast %cst_101 : f32 to vector<2x32xf32>
    %400 = arith.addf %399, %398 : vector<2x32xf32>
    %401 = arith.divf %399, %400 : vector<2x32xf32>
    %402 = vector.extract_strided_slice %395 {offsets = [0, 32], sizes = [2, 32], strides = [1, 1]} : vector<2x128xf32> to vector<2x32xf32>
    %403 = arith.negf %402 : vector<2x32xf32>
    %404 = math.exp %403 : vector<2x32xf32>
    %cst_102 = arith.constant 1.000000e+00 : f32
    %405 = vector.broadcast %cst_102 : f32 to vector<2x32xf32>
    %406 = arith.addf %405, %404 : vector<2x32xf32>
    %407 = arith.divf %405, %406 : vector<2x32xf32>
    %408 = vector.extract_strided_slice %395 {offsets = [0, 64], sizes = [2, 32], strides = [1, 1]} : vector<2x128xf32> to vector<2x32xf32>
    %409 = math.tanh %408 : vector<2x32xf32>
    %410 = vector.extract_strided_slice %395 {offsets = [0, 96], sizes = [2, 32], strides = [1, 1]} : vector<2x128xf32> to vector<2x32xf32>
    %411 = arith.negf %410 : vector<2x32xf32>
    %412 = math.exp %411 : vector<2x32xf32>
    %cst_103 = arith.constant 1.000000e+00 : f32
    %413 = vector.broadcast %cst_103 : f32 to vector<2x32xf32>
    %414 = arith.addf %413, %412 : vector<2x32xf32>
    %415 = arith.divf %413, %414 : vector<2x32xf32>
    %416 = arith.mulf %407, %355 : vector<2x32xf32>
    %417 = arith.mulf %401, %409 : vector<2x32xf32>
    %418 = arith.addf %416, %417 : vector<2x32xf32>
    %419 = math.tanh %418 : vector<2x32xf32>
    %420 = arith.mulf %415, %419 : vector<2x32xf32>
    %421 = tpu.concatenate %420, %386 in 1 : vector<2x32xf32>, vector<2x32xf32> -> vector<2x64xf32>
    %cst_104 = arith.constant dense<0.000000e+00> : vector<2x128xf32>
    %422 = tpu.matmul %421, %5, %cst_104 {dimension_numbers = #tpu.dot_dimension_numbers<[1], [0], [0], [1], [0, 0, 1, 1], [], []>} : vector<2x64xf32>, vector<64x128xf32>, vector<2x128xf32> -> vector<2x128xf32>
    %423 = vector.broadcast %6 : vector<1x128xf32> to vector<2x128xf32>
    %424 = arith.addf %422, %423 : vector<2x128xf32>
    %425 = vector.extract_strided_slice %424 {offsets = [0, 0], sizes = [2, 32], strides = [1, 1]} : vector<2x128xf32> to vector<2x32xf32>
    %426 = arith.negf %425 : vector<2x32xf32>
    %427 = math.exp %426 : vector<2x32xf32>
    %cst_105 = arith.constant 1.000000e+00 : f32
    %428 = vector.broadcast %cst_105 : f32 to vector<2x32xf32>
    %429 = arith.addf %428, %427 : vector<2x32xf32>
    %430 = arith.divf %428, %429 : vector<2x32xf32>
    %431 = vector.extract_strided_slice %424 {offsets = [0, 32], sizes = [2, 32], strides = [1, 1]} : vector<2x128xf32> to vector<2x32xf32>
    %432 = arith.negf %431 : vector<2x32xf32>
    %433 = math.exp %432 : vector<2x32xf32>
    %cst_106 = arith.constant 1.000000e+00 : f32
    %434 = vector.broadcast %cst_106 : f32 to vector<2x32xf32>
    %435 = arith.addf %434, %433 : vector<2x32xf32>
    %436 = arith.divf %434, %435 : vector<2x32xf32>
    %437 = vector.extract_strided_slice %424 {offsets = [0, 64], sizes = [2, 32], strides = [1, 1]} : vector<2x128xf32> to vector<2x32xf32>
    %438 = math.tanh %437 : vector<2x32xf32>
    %439 = vector.extract_strided_slice %424 {offsets = [0, 96], sizes = [2, 32], strides = [1, 1]} : vector<2x128xf32> to vector<2x32xf32>
    %440 = arith.negf %439 : vector<2x32xf32>
    %441 = math.exp %440 : vector<2x32xf32>
    %cst_107 = arith.constant 1.000000e+00 : f32
    %442 = vector.broadcast %cst_107 : f32 to vector<2x32xf32>
    %443 = arith.addf %442, %441 : vector<2x32xf32>
    %444 = arith.divf %442, %443 : vector<2x32xf32>
    %445 = arith.mulf %436, %384 : vector<2x32xf32>
    %446 = arith.mulf %430, %438 : vector<2x32xf32>
    %447 = arith.addf %445, %446 : vector<2x32xf32>
    %448 = math.tanh %447 : vector<2x32xf32>
    %449 = arith.mulf %444, %448 : vector<2x32xf32>
    %c12 = arith.constant 12 : index
    %c0_108 = arith.constant 0 : index
    %450 = vector.load %arg16[%c12, %c0_108] : memref<16x32xf32, #tpu.memory_space<vmem>>, vector<2x32xf32>
    tpu.vector_store %arg16[%c12, %c0_108], %420 {strides = array<i32>} : memref<16x32xf32, #tpu.memory_space<vmem>>, vector<2x32xf32>,
    %c12_109 = arith.constant 12 : index
    %c0_110 = arith.constant 0 : index
    %451 = vector.load %arg17[%c12_109, %c0_110] : memref<16x32xf32, #tpu.memory_space<vmem>>, vector<2x32xf32>
    tpu.vector_store %arg17[%c12_109, %c0_110], %449 {strides = array<i32>} : memref<16x32xf32, #tpu.memory_space<vmem>>, vector<2x32xf32>,
    %452 = tpu.concatenate %420, %449 in 1 : vector<2x32xf32>, vector<2x32xf32> -> vector<2x64xf32>
    %c7 = arith.constant 7 : index
    %c0_111 = arith.constant 0 : index
    %c0_112 = arith.constant 0 : index
    %453 = vector.load %arg1[%c7, %c0_111, %c0_112] : memref<8x2x128xf32, #tpu.memory_space<vmem>>, vector<1x2x128xf32>
    %454 = vector.shape_cast %453 : vector<1x2x128xf32> to vector<2x128xf32>
    %cst_113 = arith.constant dense<0.000000e+00> : vector<2x128xf32>
    %455 = tpu.matmul %452, %3, %cst_113 {dimension_numbers = #tpu.dot_dimension_numbers<[1], [0], [0], [1], [0, 0, 1, 1], [], []>} : vector<2x64xf32>, vector<64x128xf32>, vector<2x128xf32> -> vector<2x128xf32>
    %456 = arith.addf %454, %455 : vector<2x128xf32>
    %457 = vector.broadcast %4 : vector<1x128xf32> to vector<2x128xf32>
    %458 = arith.addf %456, %457 : vector<2x128xf32>
    %459 = vector.extract_strided_slice %458 {offsets = [0, 0], sizes = [2, 32], strides = [1, 1]} : vector<2x128xf32> to vector<2x32xf32>
    %460 = arith.negf %459 : vector<2x32xf32>
    %461 = math.exp %460 : vector<2x32xf32>
    %cst_114 = arith.constant 1.000000e+00 : f32
    %462 = vector.broadcast %cst_114 : f32 to vector<2x32xf32>
    %463 = arith.addf %462, %461 : vector<2x32xf32>
    %464 = arith.divf %462, %463 : vector<2x32xf32>
    %465 = vector.extract_strided_slice %458 {offsets = [0, 32], sizes = [2, 32], strides = [1, 1]} : vector<2x128xf32> to vector<2x32xf32>
    %466 = arith.negf %465 : vector<2x32xf32>
    %467 = math.exp %466 : vector<2x32xf32>
    %cst_115 = arith.constant 1.000000e+00 : f32
    %468 = vector.broadcast %cst_115 : f32 to vector<2x32xf32>
    %469 = arith.addf %468, %467 : vector<2x32xf32>
    %470 = arith.divf %468, %469 : vector<2x32xf32>
    %471 = vector.extract_strided_slice %458 {offsets = [0, 64], sizes = [2, 32], strides = [1, 1]} : vector<2x128xf32> to vector<2x32xf32>
    %472 = math.tanh %471 : vector<2x32xf32>
    %473 = vector.extract_strided_slice %458 {offsets = [0, 96], sizes = [2, 32], strides = [1, 1]} : vector<2x128xf32> to vector<2x32xf32>
    %474 = arith.negf %473 : vector<2x32xf32>
    %475 = math.exp %474 : vector<2x32xf32>
    %cst_116 = arith.constant 1.000000e+00 : f32
    %476 = vector.broadcast %cst_116 : f32 to vector<2x32xf32>
    %477 = arith.addf %476, %475 : vector<2x32xf32>
    %478 = arith.divf %476, %477 : vector<2x32xf32>
    %479 = arith.mulf %470, %418 : vector<2x32xf32>
    %480 = arith.mulf %464, %472 : vector<2x32xf32>
    %481 = arith.addf %479, %480 : vector<2x32xf32>
    %482 = math.tanh %481 : vector<2x32xf32>
    %483 = arith.mulf %478, %482 : vector<2x32xf32>
    %484 = tpu.concatenate %483, %449 in 1 : vector<2x32xf32>, vector<2x32xf32> -> vector<2x64xf32>
    %cst_117 = arith.constant dense<0.000000e+00> : vector<2x128xf32>
    %485 = tpu.matmul %484, %5, %cst_117 {dimension_numbers = #tpu.dot_dimension_numbers<[1], [0], [0], [1], [0, 0, 1, 1], [], []>} : vector<2x64xf32>, vector<64x128xf32>, vector<2x128xf32> -> vector<2x128xf32>
    %486 = vector.broadcast %6 : vector<1x128xf32> to vector<2x128xf32>
    %487 = arith.addf %485, %486 : vector<2x128xf32>
    %488 = vector.extract_strided_slice %487 {offsets = [0, 0], sizes = [2, 32], strides = [1, 1]} : vector<2x128xf32> to vector<2x32xf32>
    %489 = arith.negf %488 : vector<2x32xf32>
    %490 = math.exp %489 : vector<2x32xf32>
    %cst_118 = arith.constant 1.000000e+00 : f32
    %491 = vector.broadcast %cst_118 : f32 to vector<2x32xf32>
    %492 = arith.addf %491, %490 : vector<2x32xf32>
    %493 = arith.divf %491, %492 : vector<2x32xf32>
    %494 = vector.extract_strided_slice %487 {offsets = [0, 32], sizes = [2, 32], strides = [1, 1]} : vector<2x128xf32> to vector<2x32xf32>
    %495 = arith.negf %494 : vector<2x32xf32>
    %496 = math.exp %495 : vector<2x32xf32>
    %cst_119 = arith.constant 1.000000e+00 : f32
    %497 = vector.broadcast %cst_119 : f32 to vector<2x32xf32>
    %498 = arith.addf %497, %496 : vector<2x32xf32>
    %499 = arith.divf %497, %498 : vector<2x32xf32>
    %500 = vector.extract_strided_slice %487 {offsets = [0, 64], sizes = [2, 32], strides = [1, 1]} : vector<2x128xf32> to vector<2x32xf32>
    %501 = math.tanh %500 : vector<2x32xf32>
    %502 = vector.extract_strided_slice %487 {offsets = [0, 96], sizes = [2, 32], strides = [1, 1]} : vector<2x128xf32> to vector<2x32xf32>
    %503 = arith.negf %502 : vector<2x32xf32>
    %504 = math.exp %503 : vector<2x32xf32>
    %cst_120 = arith.constant 1.000000e+00 : f32
    %505 = vector.broadcast %cst_120 : f32 to vector<2x32xf32>
    %506 = arith.addf %505, %504 : vector<2x32xf32>
    %507 = arith.divf %505, %506 : vector<2x32xf32>
    %508 = arith.mulf %499, %447 : vector<2x32xf32>
    %509 = arith.mulf %493, %501 : vector<2x32xf32>
    %510 = arith.addf %508, %509 : vector<2x32xf32>
    %511 = math.tanh %510 : vector<2x32xf32>
    %512 = arith.mulf %507, %511 : vector<2x32xf32>
    %c14 = arith.constant 14 : index
    %c0_121 = arith.constant 0 : index
    %513 = vector.load %arg16[%c14, %c0_121] : memref<16x32xf32, #tpu.memory_space<vmem>>, vector<2x32xf32>
    tpu.vector_store %arg16[%c14, %c0_121], %483 {strides = array<i32>} : memref<16x32xf32, #tpu.memory_space<vmem>>, vector<2x32xf32>,
    %c14_122 = arith.constant 14 : index
    %c0_123 = arith.constant 0 : index
    %514 = vector.load %arg17[%c14_122, %c0_123] : memref<16x32xf32, #tpu.memory_space<vmem>>, vector<2x32xf32>
    tpu.vector_store %arg17[%c14_122, %c0_123], %512 {strides = array<i32>} : memref<16x32xf32, #tpu.memory_space<vmem>>, vector<2x32xf32>,
    %c0_124 = arith.constant 0 : index
    %c0_125 = arith.constant 0 : index
    %515 = vector.load %arg12[%c0_124, %c0_125] : memref<2x32xf32, #tpu.memory_space<vmem>>, vector<2x32xf32>
    tpu.vector_store %arg12[%c0_124, %c0_125], %483 {strides = array<i32>} : memref<2x32xf32, #tpu.memory_space<vmem>>, vector<2x32xf32>,
    %c0_126 = arith.constant 0 : index
    %c0_127 = arith.constant 0 : index
    %516 = vector.load %arg13[%c0_126, %c0_127] : memref<2x32xf32, #tpu.memory_space<vmem>>, vector<2x32xf32>
    tpu.vector_store %arg13[%c0_126, %c0_127], %481 {strides = array<i32>} : memref<2x32xf32, #tpu.memory_space<vmem>>, vector<2x32xf32>,
    %c0_128 = arith.constant 0 : index
    %c0_129 = arith.constant 0 : index
    %517 = vector.load %arg14[%c0_128, %c0_129] : memref<2x32xf32, #tpu.memory_space<vmem>>, vector<2x32xf32>
    tpu.vector_store %arg14[%c0_128, %c0_129], %512 {strides = array<i32>} : memref<2x32xf32, #tpu.memory_space<vmem>>, vector<2x32xf32>,
    %c0_130 = arith.constant 0 : index
    %c0_131 = arith.constant 0 : index
    %518 = vector.load %arg15[%c0_130, %c0_131] : memref<2x32xf32, #tpu.memory_space<vmem>>, vector<2x32xf32>
    tpu.vector_store %arg15[%c0_130, %c0_131], %510 {strides = array<i32>} : memref<2x32xf32, #tpu.memory_space<vmem>>, vector<2x32xf32>,
    %c0_132 = arith.constant 0 : index
    %c0_133 = arith.constant 0 : index
    %519 = vector.load %arg16[%c0_132, %c0_133] : memref<16x32xf32, #tpu.memory_space<vmem>>, vector<16x32xf32>
    %c0_134 = arith.constant 0 : index
    %c0_135 = arith.constant 0 : index
    %520 = vector.load %arg6[%c0_134, %c0_135] : memref<32x16xf32, #tpu.memory_space<vmem>>, vector<32x16xf32>
    %cst_136 = arith.constant dense<0.000000e+00> : vector<16x16xf32>
    %521 = tpu.matmul %519, %520, %cst_136 {dimension_numbers = #tpu.dot_dimension_numbers<[1], [0], [0], [1], [0, 0, 1, 1], [], []>} : vector<16x32xf32>, vector<32x16xf32>, vector<16x16xf32> -> vector<16x16xf32>
    %c0_137 = arith.constant 0 : index
    %c0_138 = arith.constant 0 : index
    %522 = vector.load %arg7[%c0_137, %c0_138] : memref<1x16xf32, #tpu.memory_space<vmem>>, vector<1x16xf32>
    %523 = vector.broadcast %522 : vector<1x16xf32> to vector<16x16xf32>
    %524 = arith.addf %521, %523 : vector<16x16xf32>
    %c0_139 = arith.constant 0 : index
    %c0_140 = arith.constant 0 : index
    %525 = vector.load %arg10[%c0_139, %c0_140] : memref<16x16xf32, #tpu.memory_space<vmem>>, vector<16x16xf32>
    tpu.vector_store %arg10[%c0_139, %c0_140], %524 {strides = array<i32>} : memref<16x16xf32, #tpu.memory_space<vmem>>, vector<16x16xf32>,
    %c0_141 = arith.constant 0 : index
    %c0_142 = arith.constant 0 : index
    %526 = vector.load %arg17[%c0_141, %c0_142] : memref<16x32xf32, #tpu.memory_space<vmem>>, vector<16x32xf32>
    %c0_143 = arith.constant 0 : index
    %c0_144 = arith.constant 0 : index
    %527 = vector.load %arg8[%c0_143, %c0_144] : memref<32x16xf32, #tpu.memory_space<vmem>>, vector<32x16xf32>
    %cst_145 = arith.constant dense<0.000000e+00> : vector<16x16xf32>
    %528 = tpu.matmul %526, %527, %cst_145 {dimension_numbers = #tpu.dot_dimension_numbers<[1], [0], [0], [1], [0, 0, 1, 1], [], []>} : vector<16x32xf32>, vector<32x16xf32>, vector<16x16xf32> -> vector<16x16xf32>
    %c0_146 = arith.constant 0 : index
    %c0_147 = arith.constant 0 : index
    %529 = vector.load %arg9[%c0_146, %c0_147] : memref<1x16xf32, #tpu.memory_space<vmem>>, vector<1x16xf32>
    %530 = vector.broadcast %529 : vector<1x16xf32> to vector<16x16xf32>
    %531 = arith.addf %528, %530 : vector<16x16xf32>
    %c0_148 = arith.constant 0 : index
    %c0_149 = arith.constant 0 : index
    %532 = vector.load %arg11[%c0_148, %c0_149] : memref<16x16xf32, #tpu.memory_space<vmem>>, vector<16x16xf32>
    tpu.vector_store %arg11[%c0_148, %c0_149], %531 {strides = array<i32>} : memref<16x16xf32, #tpu.memory_space<vmem>>, vector<16x16xf32>,
    return
  }
  func.func @transform_0(%arg0: i32) -> (i32, i32, i32) {
    %c0_i32 = arith.constant 0 : i32
    %c0_i32_0 = arith.constant 0 : i32
    %c0_i32_1 = arith.constant 0 : i32
    return %arg0, %c0_i32, %c0_i32_0 : i32, i32, i32
  }
  func.func @transform_1(%arg0: i32) -> (i32, i32) {
    %c0_i32 = arith.constant 0 : i32
    %c0_i32_0 = arith.constant 0 : i32
    %c0_i32_1 = arith.constant 0 : i32
    return %c0_i32, %c0_i32_0 : i32, i32
  }
  func.func @transform_2(%arg0: i32) -> (i32, i32) {
    %c0_i32 = arith.constant 0 : i32
    %c0_i32_0 = arith.constant 0 : i32
    %c0_i32_1 = arith.constant 0 : i32
    return %c0_i32, %c0_i32_0 : i32, i32
  }
  func.func @transform_3(%arg0: i32) -> (i32, i32) {
    %c0_i32 = arith.constant 0 : i32
    %c0_i32_0 = arith.constant 0 : i32
    %c0_i32_1 = arith.constant 0 : i32
    return %c0_i32, %c0_i32_0 : i32, i32
  }
  func.func @transform_4(%arg0: i32) -> (i32, i32) {
    %c0_i32 = arith.constant 0 : i32
    %c0_i32_0 = arith.constant 0 : i32
    %c0_i32_1 = arith.constant 0 : i32
    return %c0_i32, %c0_i32_0 : i32, i32
  }
  func.func @transform_5(%arg0: i32) -> (i32, i32) {
    %c0_i32 = arith.constant 0 : i32
    %c0_i32_0 = arith.constant 0 : i32
    %c0_i32_1 = arith.constant 0 : i32
    return %c0_i32, %c0_i32_0 : i32, i32
  }
  func.func @transform_6(%arg0: i32) -> (i32, i32) {
    %c0_i32 = arith.constant 0 : i32
    %c0_i32_0 = arith.constant 0 : i32
    %c0_i32_1 = arith.constant 0 : i32
    return %c0_i32, %c0_i32_0 : i32, i32
  }
  func.func @transform_7(%arg0: i32) -> (i32, i32) {
    %c0_i32 = arith.constant 0 : i32
    %c0_i32_0 = arith.constant 0 : i32
    %c0_i32_1 = arith.constant 0 : i32
    return %c0_i32, %c0_i32_0 : i32, i32
  }
  func.func @transform_8(%arg0: i32) -> (i32, i32) {
    %c0_i32 = arith.constant 0 : i32
    %c0_i32_0 = arith.constant 0 : i32
    %c0_i32_1 = arith.constant 0 : i32
    return %c0_i32, %c0_i32_0 : i32, i32
  }
  func.func @transform_9(%arg0: i32) -> (i32, i32) {
    %c0_i32 = arith.constant 0 : i32
    %c0_i32_0 = arith.constant 0 : i32
    return %arg0, %c0_i32 : i32, i32
  }
  func.func @transform_10(%arg0: i32) -> (i32, i32) {
    %c0_i32 = arith.constant 0 : i32
    %c0_i32_0 = arith.constant 0 : i32
    return %arg0, %c0_i32 : i32, i32
  }
}

</mosaic_0001>

<bundles_post_ra>
// kernel: grid_lstm_net_forward.2
= control target key start
LH: loop header
LB: loop body
LE: loop exit
PB: predicated region body
PF: predicated region fallthrough
CT: control target
= control target key end

     0   :  { %v1162_v0 = vmov 0.0|0.0   ;;  %vm1163_vm0 = vmmov 0   ;;  %v1164_v3 = vmov 0.0   ;;  %vm21_vm1 = vcmask 130048   ;;  %s1166_s18 = smov 64   ;;  %s1167_s19 = smov 112   ;;  %s1309_s1 = inlined_call_operand.vmem [shape: f32[16,96], index: 1, kind: input, shape index: {}]   ;;  %s1310_s0 = inlined_call_operand.vmem [shape: f32[2,8,16], index: 0, kind: input, shape index: {}]   ;;  %s1311_s2 = inlined_call_operand.vmem [shape: f32[32,128], index: 2, kind: input, shape index: {}]   ;;  %s1312_s3 = inlined_call_operand.vmem [shape: f32[2,8,128], index: 3, kind: output, shape index: {}]  }
   0x1   :  { %1119 = vmatprep.subr.bf16.mxu1 %v1162_v0  ;;  %v14_v1 = vld [vmem:[%s1309_s1] sm:$0xff]  ;;  %v15_v2 = vld [vmem:[%s1309_s1 + $0x8] sm:$0xff]  ;;  %1047 = vmatprep.mubr.msk.f32.mxu1 %vm1163_vm0, %v1164_v3  ;;  %s1165_s1 = smov 80   ;;  %vm174_vm2 = vcmask 64512   ;;  %s1168_s20 = smov 48   ;;  %v18_v38 = vld [vmem:[%s1311_s2 + $0x10] sm:$0xff] }
   0x2   :  { %v1200_v4 = vpack.c.bf16 %v15_v2, %v14_v1  ;;  %1055 = vmatprep.subr.mxu0 %v1164_v3  ;;  %1057 = vmatprep.mubr.msk.f32.mxu0 %vm1163_vm0, %v1164_v3  ;;  %v20_v5 = vld [vmem:[%s1310_s0] sm:$0xff]  ;;  %s1169_s21 = smov 96   ;;  %v1001_v34 = vld [vmem:[%s1310_s0 + $0x8] sm:$0xff]  ;;  %v19_v40 = vld [vmem:[%s1311_s2 + $0x18] sm:$0xff]  ;;  %s1170_s4 = smov 16   ;;  %vm430_vm3 = vcmask 261120  }
   0x3   :  { %v16_v36 = vld [vmem:[%s1311_s2] sm:$0xff]  ;;  %v17_v37 = vld [vmem:[%s1311_s2 + $0x8] sm:$0xff]  ;;  %v1263_v41 = vpack.c.bf16 %v19_v40, %v18_v38 }
   0x4   :  { %1121 = vmatpush3.bf16.msra.mxu1 %v1200_v4  ;;  %v1257_v39 = vpack.c.bf16 %v17_v37, %v16_v36 }
   0x5   :  { %1050 = vmatprep.subr.mxu1 %v1164_v3 }
   0x7   :  { %1048 = vmatmul.mubr.msk.f32.vlgmr.msra.gmra.mrb[0].mxu1 %vm21_vm1, %v20_v5 }
   0x8   :  { %1052 = vmatprep.mubr.msk.f32.mxu1 %vm1163_vm0, %v1164_v3 }
  0xda   :  { %v91_v6 = vpop.f32.mrb[0].mxu1 }
  0xdb   :  { %96 = vrot.lane.b32.xlu1 %v91_v6, %s1165_s1  ;;  %186 = vrot.lane.b32.xlu0 %v91_v6, %s1166_s18  ;;  %v1049_v7 = vpop.f32.mrb[1].mxu1 }
  0xdf   :  { %98 = vrot.lane.b32.xlu0 %v91_v6, %s1167_s19 }
 0x14d   :  { %v187_v8 = vpop.permute.xlu0 %186  ;;  %v97_v10 = vpop.permute.xlu1 %96 }
 0x14e   :  { %1056 = vmatpush3.xpose.msk.msra.mxu0 %vm21_vm1, %v187_v8 }
 0x14f   :  { %1065 = vmatprep.subr.mxu0 %v1164_v3 }
 0x151   :  { %1058 = vmatmul.mubr.msk.f32.vlgmr.msra.gmra.mrb[0].mxu0 %vm21_vm1, %v91_v6  ;;  %v99_v9 = vpop.permute.xlu0 %98 }
 0x152   :  { %1051 = vmatpush3.xpose.msk.msra.mxu1 %vm21_vm1, %v99_v9  ;;  %1067 = vmatprep.mubr.msk.f32.mxu0 %vm1163_vm0, %v1164_v3 }
 0x153   :  { %1060 = vmatprep.subr.mxu1 %v1164_v3 }
 0x155   :  { %1053 = vmatmul.mubr.msk.f32.vlgmr.msra.gmra.mrb[2].mxu1 %vm21_vm1, %v97_v10 }
 0x156   :  { %1062 = vmatprep.mubr.msk.f32.mxu1 %vm1163_vm0, %v1164_v3 }
 0x224   :  { %v258_v11 = vpop.f32.mrb[0].mxu0 }
 0x225   :  { %v1059_v12 = vpop.f32.mrb[1].mxu0  ;;  %v262_v13 = vsel %vm174_vm2, %v258_v11, -inf }
 0x226   :  { %263 = vmax.xlane.f32.xlu1 %v262_v13 }
 0x228   :  { %v170_v14 = vpop.f32.mrb[2].mxu1 }
 0x229   :  { %v1054_v15 = vpop.f32.mrb[3].mxu1  ;;  %v175_v16 = vsel %vm174_vm2, %v170_v14, -inf }
 0x22a   :  { %176 = vmax.xlane.f32.xlu0 %v175_v16 }
 0x237   :  { %349 = vrot.lane.b32.xlu1 %v91_v6, %s1168_s20 }
 0x2b3   :  { %v264_v17 = vpop.xlane.xlu1 %263 }
 0x2b4   :  { %v265_v18 = vsub.f32 %v258_v11, %v264_v17 }
 0x2b6   :  { %v266_v19 = vmul.f32 1.442695, %v265_v18 }
 0x2b7   :  { %v350_v20 = vpop.permute.xlu1 %349  ;;  %v177_v21 = vpop.xlane.xlu0 %176 }
 0x2b8   :  { %1146 = vpow2.f32 %v266_v19  ;;  %v178_v22 = vsub.f32 %v170_v14, %v177_v21  ;;  %1066 = vmatpush3.msra.mxu0 %v350_v20 }
 0x2b9   :  { %1128 = vmatprep.subr.bf16.mxu0 %v1162_v0 }
 0x2ba   :  { %v179_v23 = vmul.f32 1.442695, %v178_v22 }
 0x2bc   :  { %1148 = vpow2.f32 %v179_v23 }
 0x2c2   :  { %v1147_v24 = vpop.eup %1146 }
 0x2c3   :  { %v268_v25 = vsel %vm174_vm2, %v1147_v24, 0.0 }
 0x2c4   :  { %269 = vadd.xlane.f32.xlu0 %v268_v25 }
 0x2c6   :  { %v1149_v26 = vpop.eup %1148 }
 0x2c7   :  { %v181_v27 = vsel %vm174_vm2, %v1149_v26, 0.0 }
 0x2c8   :  { %182 = vadd.xlane.f32.xlu0 %v181_v27 }
 0x2de   :  { %273 = vrot.lane.b32.xlu0 %v91_v6, %s1169_s21 }
 0x351   :  { %v270_v28 = vpop.xlane.xlu0 %269 }
 0x352   :  { %1150 = vrcp.f32 %v270_v28 }
 0x355   :  { %v183_v29 = vpop.xlane.xlu0 %182 }
 0x356   :  { %1152 = vrcp.f32 %v183_v29 }
 0x359   :  { %v274_v30 = vpop.permute.xlu0 %273 }
 0x35a   :  { %1061 = vmatpush3.msra.mxu1 %v274_v30 }
 0x35b   :  { %1122 = vmatprep.subr.bf16.mxu1 %v1162_v0 }
 0x35c   :  { %v1151_v31 = vpop.eup %1150 }
 0x35d   :  { %v272_v32 = vmul.f32 %v1151_v31, %v1147_v24 }
 0x35f   :  { %1068 = vmatmul.mubr.msk.f32.vlgmr.msra.gmra.mrb[2].mxu0 %vm174_vm2, %v272_v32 }
 0x360   :  { %v1153_v33 = vpop.eup %1152  ;;  %1130 = vmatpush3.bf16.msra.mxu0 %v1200_v4  ;;  %1085 = vmatprep.mubr.msk.f32.mxu0 %vm1163_vm0, %v1164_v3 }
 0x361   :  { %v185_v35 = vmul.f32 %v1153_v33, %v1149_v26  ;;  %1088 = vmatprep.subr.mxu0 %v1164_v3 }
 0x363   :  { %1063 = vmatmul.mubr.msk.f32.vlgmr.msra.gmra.mrb[4].mxu1 %vm174_vm2, %v185_v35  ;;  %1086 = vmatmul.mubr.msk.f32.vlgmr.msra.gmra.mrb[4].mxu0 %vm21_vm1, %v1001_v34 }
 0x364   :  { %1078 = vmatprep.mubr.msk.f32.mxu1 %vm1163_vm0, %v1164_v3  ;;  %1090 = vmatprep.mubr.msk.f32.mxu0 %vm1163_vm0, %v1164_v3 }
 0x365   :  { %1124 = vmatpush3.bf16.msra.mxu1 %v1257_v39 }
 0x366   :  { %1125 = vmatprep.subr.bf16.mxu1 %v1162_v0 }
 0x369   :  { %1127 = vmatpush3.bf16.msra.mxu1 %v1263_v41 }
 0x36a   :  { %1093 = vmatprep.subr.mxu1 %v1164_v3 }
 0x432   :  { %v421_v42 = vpop.f32.mrb[2].mxu0 }
 0x433   :  { %426 = vrot.lane.b32.xlu1 %v421_v42, %s1170_s4  ;;  %v1069_v43 = vpop.f32.mrb[3].mxu0 }
 0x436   :  { %v345_v44 = vpop.f32.mrb[4].mxu1  ;;  %v576_v45 = vpop.f32.mrb[4].mxu0 }
 0x437   :  { %581 = vrot.lane.b32.xlu0 %v576_v45, %s1165_s1  ;;  %670 = vrot.lane.b32.xlu1 %v576_v45, %s1166_s18  ;;  %v1064_v46 = vpop.f32.mrb[5].mxu1  ;;  %v1087_v47 = vpop.f32.mrb[5].mxu0 }
 0x43b   :  { %583 = vrot.lane.b32.xlu1 %v576_v45, %s1167_s19 }
 0x4a5   :  { %v427_v48 = vpop.permute.xlu1 %426 }
 0x4a6   :  { %v429_v49 = vsel %vm21_vm1, %v345_v44, %v427_v48 }
 0x4a7   :  { %1079 = vmatmul.mubr.msk.f32.vlgmr.msra.gmra.mrb[6].mxu1 %vm430_vm3, %v429_v49 }
 0x4a8   :  { %1095 = vmatprep.mubr.msk.f32.mxu1 %vm1163_vm0, %v1164_v3 }
 0x4a9   :  { %v671_v50 = vpop.permute.xlu1 %670  ;;  %v582_v52 = vpop.permute.xlu0 %581 }
 0x4aa   :  { %1094 = vmatpush3.xpose.msk.msra.mxu1 %vm21_vm1, %v671_v50 }
 0x4ab   :  { %1103 = vmatprep.subr.mxu1 %v1164_v3 }
 0x4ad   :  { %v584_v51 = vpop.permute.xlu1 %583  ;;  %1096 = vmatmul.mubr.msk.f32.vlgmr.msra.gmra.mrb[8].mxu1 %vm21_vm1, %v576_v45 }
 0x4ae   :  { %1089 = vmatpush3.xpose.msk.msra.mxu0 %vm21_vm1, %v584_v51  ;;  %1105 = vmatprep.mubr.msk.f32.mxu1 %vm1163_vm0, %v1164_v3 }
 0x4af   :  { %1098 = vmatprep.subr.mxu0 %v1164_v3 }
 0x4b1   :  { %1091 = vmatmul.mubr.msk.f32.vlgmr.msra.gmra.mrb[6].mxu0 %vm21_vm1, %v582_v52 }
 0x4b2   :  { %1100 = vmatprep.mubr.msk.f32.mxu0 %vm1163_vm0, %v1164_v3 }
 0x57a   :  { %v500_v53 = vpop.f32.mrb[6].mxu1 }
 0x57b   :  { %504 = vst [vmem:[%s1312_s3] sm:$0xff] %v500_v53  ;;  %v1080_v54 = vpop.f32.mrb[7].mxu1 }
 0x580   :  { %v742_v55 = vpop.f32.mrb[8].mxu1 }
 0x581   :  { %v1097_v56 = vpop.f32.mrb[9].mxu1  ;;  %v746_v57 = vsel %vm174_vm2, %v742_v55, -inf }
 0x582   :  { %747 = vmax.xlane.f32.xlu1 %v746_v57 }
 0x584   :  { %v655_v58 = vpop.f32.mrb[6].mxu0 }
 0x585   :  { %v1092_v59 = vpop.f32.mrb[7].mxu0  ;;  %v659_v60 = vsel %vm174_vm2, %v655_v58, -inf }
 0x586   :  { %660 = vmax.xlane.f32.xlu0 %v659_v60 }
 0x593   :  { %833 = vrot.lane.b32.xlu1 %v576_v45, %s1168_s20 }
 0x60f   :  { %v748_v61 = vpop.xlane.xlu1 %747 }
 0x610   :  { %v749_v62 = vsub.f32 %v742_v55, %v748_v61 }
 0x612   :  { %v750_v63 = vmul.f32 1.442695, %v749_v62 }
 0x613   :  { %v661_v1 = vpop.xlane.xlu0 %660  ;;  %v834_v2 = vpop.permute.xlu1 %833 }
 0x614   :  { %1154 = vpow2.f32 %v750_v63  ;;  %v662_v4 = vsub.f32 %v655_v58, %v661_v1  ;;  %1104 = vmatpush3.msra.mxu1 %v834_v2 }
 0x616   :  { %v663_v5 = vmul.f32 1.442695, %v662_v4 }
 0x618   :  { %1156 = vpow2.f32 %v663_v5 }
 0x61e   :  { %v1155_v6 = vpop.eup %1154 }
 0x61f   :  { %v752_v7 = vsel %vm174_vm2, %v1155_v6, 0.0 }
 0x620   :  { %753 = vadd.xlane.f32.xlu0 %v752_v7 }
 0x622   :  { %v1157_v8 = vpop.eup %1156 }
 0x623   :  { %v665_v9 = vsel %vm174_vm2, %v1157_v8, 0.0 }
 0x624   :  { %666 = vadd.xlane.f32.xlu0 %v665_v9 }
 0x63a   :  { %757 = vrot.lane.b32.xlu0 %v576_v45, %s1169_s21 }
 0x6ad   :  { %v754_v10 = vpop.xlane.xlu0 %753 }
 0x6ae   :  { %1158 = vrcp.f32 %v754_v10 }
 0x6b1   :  { %v667_v11 = vpop.xlane.xlu0 %666 }
 0x6b2   :  { %1160 = vrcp.f32 %v667_v11 }
 0x6b5   :  { %v758_v12 = vpop.permute.xlu0 %757 }
 0x6b6   :  { %1099 = vmatpush3.msra.mxu0 %v758_v12 }
 0x6b7   :  { %1131 = vmatprep.subr.bf16.mxu0 %v1162_v0 }
 0x6b8   :  { %v1159_v13 = vpop.eup %1158 }
 0x6b9   :  { %v756_v14 = vmul.f32 %v1159_v13, %v1155_v6 }
 0x6bb   :  { %1106 = vmatmul.mubr.msk.f32.vlgmr.msra.gmra.mrb[10].mxu1 %vm174_vm2, %v756_v14 }
 0x6bc   :  { %v1161_v15 = vpop.eup %1160 }
 0x6bd   :  { %v669_v16 = vmul.f32 %v1161_v15, %v1157_v8 }
 0x6bf   :  { %1101 = vmatmul.mubr.msk.f32.vlgmr.msra.gmra.mrb[8].mxu0 %vm174_vm2, %v669_v16 }
 0x6c0   :  { %1133 = vmatpush3.bf16.msra.mxu0 %v1257_v39  ;;  %1116 = vmatprep.mubr.msk.f32.mxu0 %vm1163_vm0, %v1164_v3 }
 0x6c1   :  { %1134 = vmatprep.subr.bf16.mxu0 %v1162_v0 }
 0x6c4   :  { %1136 = vmatpush3.bf16.msra.mxu0 %v1263_v41 }
 0x78e   :  { %v905_v17 = vpop.f32.mrb[10].mxu1 }
 0x78f   :  { %910 = vrot.lane.b32.xlu1 %v905_v17, %s1170_s4  ;;  %v1107_v18 = vpop.f32.mrb[11].mxu1 }
 0x792   :  { %v829_v19 = vpop.f32.mrb[8].mxu0 }
 0x793   :  { %v1102_v20 = vpop.f32.mrb[9].mxu0 }
 0x801   :  { %v911_v21 = vpop.permute.xlu1 %910 }
 0x802   :  { %v913_v22 = vsel %vm21_vm1, %v829_v19, %v911_v21 }
 0x803   :  { %1117 = vmatmul.mubr.msk.f32.vlgmr.msra.gmra.mrb[10].mxu0 %vm430_vm3, %v913_v22 }
 0x8d6   :  { %v983_v23 = vpop.f32.mrb[10].mxu0 }
 0x8d7   :  { %1010 = vst [vmem:[%s1312_s3 + $0x8] sm:$0xff] %v983_v23  ;;  %v1118_v3 = vpop.f32.mrb[11].mxu0 }

// kernel: grid_lstm_net_forward.3
= control target key start
LH: loop header
LB: loop body
LE: loop exit
PB: predicated region body
PF: predicated region fallthrough
CT: control target
= control target key end

     0   :  { %16 = vsyncpa [#allocation9], 0  ;;  %vm40_vm0 = vcmask 254976   ;;  %v2956_v2 = vmov 0.0   ;;  %v2957_v3 = vmov 0.0|0.0   ;;  %vm2958_vm1 = vmmov 0   ;;  %s3585_s0 = inlined_call_operand.vmem [shape: f32[8,2,128], index: 0, kind: input, shape index: {}]   ;;  %s3586_s1 = inlined_call_operand.vmem [shape: f32[64,128], index: 1, kind: input, shape index: {}]   ;;  %s3587_s2 = inlined_call_operand.vmem [shape: f32[1,128], index: 2, kind: input, shape index: {}]   ;;  %s3588_s3 = inlined_call_operand.vmem [shape: f32[64,128], index: 3, kind: input, shape index: {}]   ;;  %s3589_s4 = inlined_call_operand.vmem [shape: f32[1,128], index: 4, kind: input, shape index: {}]   ;;  %s3590_s5 = inlined_call_operand.vmem [shape: f32[32,16], index: 5, kind: input, shape index: {}]   ;;  %s3591_s6 = inlined_call_operand.vmem [shape: f32[1,16], index: 6, kind: input, shape index: {}]   ;;  %s3592_s7 = inlined_call_operand.vmem [shape: f32[32,16], index: 7, kind: input, shape index: {}]   ;;  %s3593_s8 = inlined_call_operand.vmem [shape: f32[1,16], index: 8, kind: input, shape index: {}]   ;;  %s3594_s9 = inlined_call_operand.hbm [shape: f32[16,16], index: 9, kind: output, shape index: {0}]   ;;  %s3595_s10 = inlined_call_operand.hbm [shape: f32[16,16], index: 10, kind: output, shape index: {1}]  }
   0x1   :  { %v45_v0 = vld [vmem:[%s3586_s1] sm:$0xff]  ;;  %v46_v1 = vld [vmem:[%s3586_s1 + $0x8] sm:$0xff]  ;;  %43 = vst.msk [vmem:[#allocation4] sm:$0x3] %vm40_vm0, %v2956_v2  ;;  %41 = vst.msk [vmem:[#allocation2] sm:$0x3] %vm40_vm0, %v2956_v2  ;;  %2560 = vmatprep.subr.bf16.mxu0 %v2957_v3  ;;  %2572 = vmatprep.subr.bf16.mxu1 %v2957_v3 }
   0x2   :  { %42 = vst.msk [vmem:[#allocation3] sm:$0x3] %vm40_vm0, %v2956_v2  ;;  %44 = vst.msk [vmem:[#allocation5] sm:$0x3] %vm40_vm0, %v2956_v2  ;;  %v3036_v4 = vpack.c.bf16 %v46_v1, %v45_v0  ;;  %v47_v5 = vld [vmem:[%s3586_s1 + $0x10] sm:$0xff]  ;;  %v48_v6 = vld [vmem:[%s3586_s1 + $0x18] sm:$0xff]  ;;  %2250 = vmatprep.mubr.msk.f32.mxu0 %vm2958_vm1, %v2956_v2  ;;  %2269 = vmatprep.mubr.msk.f32.mxu1 %vm2958_vm1, %v2956_v2 }
   0x3   :  { %v3050_v7 = vpack.c.bf16 %v48_v6, %v47_v5 }
   0x4   :  { %2562 = vmatpush3.bf16.msra.mxu0 %v3036_v4 }
   0x5   :  { %17 = vsyncpa [#allocation11], 0  ;;  %2563 = vmatprep.subr.bf16.mxu0 %v2957_v3  ;;  %v49_v8 = vld [vmem:[%s3586_s1 + $0x20] sm:$0xff]  ;;  %v50_v9 = vld [vmem:[%s3586_s1 + $0x28] sm:$0xff]  ;;  %s2959_s29 = smov 32   ;;  %vm71_vm2 = vcmask 261120  }
   0x6   :  { %v3060_v10 = vpack.c.bf16 %v50_v9, %v49_v8  ;;  %v51_v11 = vld [vmem:[%s3586_s1 + $0x30] sm:$0xff]  ;;  %v52_v13 = vld [vmem:[%s3586_s1 + $0x38] sm:$0xff]  ;;  %vm74_vm3 = vcmask 523264   ;;  %v73_v19 = vld [vmem:[%s3585_s0] sm:$0x3]  ;;  %s2960_s13 = smov 64  }
   0x7   :  { %v3072_v15 = vpack.c.bf16 %v52_v13, %v51_v11  ;;  %v3098_v20 = vld [vmem:[%s3587_s2] ss:$0 sm:$0xff]  ;;  %v55_v37 = vld [vmem:[%s3588_s3 + $0x8] sm:$0xff]  ;;  %v56_v38 = vld [vmem:[%s3588_s3 + $0x10] sm:$0xff]  ;;  %vm1900_vm4 = vcmask 130048  }
   0x8   :  { %2565 = vmatpush3.bf16.msra.mxu0 %v3050_v7  ;;  %v65_v12 = vld [vmem:[#allocation4] sm:$0x3]  ;;  %v63_v16 = vld [vmem:[#allocation2] sm:$0x3]  ;;  %v57_v40 = vld [vmem:[%s3588_s3 + $0x18] sm:$0xff] }
   0x9   :  { %2566 = vmatprep.subr.bf16.mxu0 %v2957_v3  ;;  %v64_v14 = vld [vmem:[#allocation3] sm:$0x3]  ;;  %68 = vrot.lane.b32.xlu0 %v65_v12, %s2959_s29  ;;  %v3121_v41 = vpack.c.bf16 %v57_v40, %v56_v38  ;;  %v59_v43 = vld [vmem:[%s3588_s3 + $0x28] sm:$0xff]  ;;  %v60_v45 = vld [vmem:[%s3588_s3 + $0x30] sm:$0xff] }
   0xa   :  { %164 = vrot.lane.b32.xlu1 %v64_v14, %s2959_s29  ;;  %v54_v36 = vld [vmem:[%s3588_s3] sm:$0xff]  ;;  %v61_v46 = vld [vmem:[%s3588_s3 + $0x38] sm:$0xff] }
   0xb   :  { %v3115_v39 = vpack.c.bf16 %v55_v37, %v54_v36  ;;  %v58_v42 = vld [vmem:[%s3588_s3 + $0x20] sm:$0xff]  ;;  %v3142_v48 = vpack.c.bf16 %v61_v46, %v60_v45 }
   0xc   :  { %2568 = vmatpush3.bf16.msra.mxu0 %v3060_v10  ;;  %v3131_v44 = vpack.c.bf16 %v59_v43, %v58_v42  ;;  %v66_v51 = vld [vmem:[#allocation5] sm:$0x3]  ;;  %v3166_v54 = vld [vmem:[%s3589_s4] ss:$0 sm:$0xff] }
   0xd   :  { %2569 = vmatprep.subr.bf16.mxu0 %v2957_v3  ;;  %2574 = vmatpush3.bf16.msra.mxu1 %v3115_v39 }
   0xe   :  { %2575 = vmatprep.subr.bf16.mxu1 %v2957_v3 }
  0x10   :  { %2571 = vmatpush3.bf16.msra.mxu0 %v3072_v15 }
  0x11   :  { %2584 = vmatprep.subr.bf16.mxu0 %v2957_v3  ;;  %2577 = vmatpush3.bf16.msra.mxu1 %v3121_v41 }
  0x12   :  { %2578 = vmatprep.subr.bf16.mxu1 %v2957_v3 }
  0x15   :  { %2580 = vmatpush3.bf16.msra.mxu1 %v3131_v44 }
  0x16   :  { %2581 = vmatprep.subr.bf16.mxu1 %v2957_v3 }
  0x19   :  { %2583 = vmatpush3.bf16.msra.mxu1 %v3142_v48 }
  0x1a   :  { %2596 = vmatprep.subr.bf16.mxu1 %v2957_v3 }
  0x7b   :  { %v3077_v17 = vpop.permute.xlu0 %68 }
  0x7c   :  { %v72_v18 = vsel %vm71_vm2, %v63_v16, %v3077_v17  ;;  %v165_v32 = vpop.permute.xlu1 %164  ;;  %v2037_v16 = vld [vmem:[%s3585_s0 + $0x2] sm:$0x3] }
  0x7d   :  { %2251 = vmatmul.mubr.msk.f32.vlgmr.msra.gmra.mrb[0].mxu0 %vm74_vm3, %v72_v18 }
  0x7e   :  { %2586 = vmatpush3.bf16.msra.mxu0 %v3036_v4  ;;  %2288 = vmatprep.mubr.msk.f32.mxu0 %vm2958_vm1, %v2956_v2 }
  0x7f   :  { %2587 = vmatprep.subr.bf16.mxu0 %v2957_v3 }
  0x82   :  { %2589 = vmatpush3.bf16.msra.mxu0 %v3050_v7 }
  0x83   :  { %2590 = vmatprep.subr.bf16.mxu0 %v2957_v3 }
  0x86   :  { %2592 = vmatpush3.bf16.msra.mxu0 %v3060_v10 }
  0x87   :  { %2593 = vmatprep.subr.bf16.mxu0 %v2957_v3 }
  0x8a   :  { %2595 = vmatpush3.bf16.msra.mxu0 %v3072_v15 }
  0x8b   :  { %2608 = vmatprep.subr.bf16.mxu0 %v2957_v3 }
 0x150   :  { %v144_v21 = vpop.f32.mrb[0].mxu0 }
 0x151   :  { %v148_v22 = vadd.f32 %v144_v21, %v73_v19  ;;  %v2252_v23 = vpop.f32.mrb[1].mxu0 }
 0x153   :  { %v155_v24 = vadd.f32 %v3098_v20, %v148_v22 }
 0x155   :  { %2778 = vtanh.f32 %v155_v24  ;;  %v2033_v26 = vmul.f32 -1.442695, %v155_v24 }
 0x157   :  { %2780 = vpow2.f32 %v2033_v26 }
 0x15f   :  { %v2779_v25 = vpop.eup %2778 }
 0x160   :  { %169 = vrot.lane.b32.xlu0 %v2779_v25, %s2960_s13 }
 0x161   :  { %v2781_v27 = vpop.eup %2780 }
 0x162   :  { %v159_v28 = vadd.f32 1.0, %v2781_v27 }
 0x164   :  { %2782 = vrcp.f32 %v159_v28 }
 0x16e   :  { %v2783_v29 = vpop.eup %2782 }
 0x16f   :  { %v167_v33 = vmul.f32 %v2783_v29, %v165_v32 }
 0x1d2   :  { %v170_v30 = vpop.permute.xlu0 %169 }
 0x1d3   :  { %v172_v31 = vmul.f32 %v2783_v29, %v170_v30 }
 0x1d5   :  { %174 = vrot.lane.b32.xlu1 %v172_v31, %s2959_s29 }
 0x247   :  { %v175_v34 = vpop.permute.xlu1 %174 }
 0x248   :  { %v3103_v35 = vadd.f32 %v175_v34, %v167_v33 }
 0x24a   :  { %2784 = vtanh.f32 %v3103_v35 }
 0x254   :  { %v2785_v47 = vpop.eup %2784 }
 0x255   :  { %180 = vrot.lane.b32.xlu0 %v2785_v47, %s2960_s13 }
 0x2c7   :  { %v181_v49 = vpop.permute.xlu0 %180 }
 0x2c8   :  { %v183_v50 = vmul.f32 %v2783_v29, %v181_v49 }
 0x2ca   :  { %185 = vrot.lane.b32.xlu1 %v183_v50, %s2959_s29 }
 0x2ce   :  { %276 = vrot.lane.b32.xlu1 %v66_v51, %s2959_s29 }
 0x33c   :  { %v186_v52 = vpop.permute.xlu1 %185 }
 0x33d   :  { %297 = vst.msk [vmem:[#allocation6] sm:$0x3] %vm40_vm0, %v186_v52  ;;  %v188_v53 = vsel %vm71_vm2, %v186_v52, %v3077_v17 }
 0x33e   :  { %2270 = vmatmul.mubr.msk.f32.vlgmr.msra.gmra.mrb[0].mxu1 %vm74_vm3, %v188_v53 }
 0x33f   :  { %2598 = vmatpush3.bf16.msra.mxu1 %v3115_v39  ;;  %2307 = vmatprep.mubr.msk.f32.mxu1 %vm2958_vm1, %v2956_v2 }
 0x340   :  { %2599 = vmatprep.subr.bf16.mxu1 %v2957_v3  ;;  %v277_v1 = vpop.permute.xlu1 %276 }
 0x343   :  { %2601 = vmatpush3.bf16.msra.mxu1 %v3121_v41 }
 0x344   :  { %2602 = vmatprep.subr.bf16.mxu1 %v2957_v3 }
 0x347   :  { %2604 = vmatpush3.bf16.msra.mxu1 %v3131_v44 }
 0x348   :  { %2605 = vmatprep.subr.bf16.mxu1 %v2957_v3 }
 0x34b   :  { %2607 = vmatpush3.bf16.msra.mxu1 %v3142_v48 }
 0x34c   :  { %2620 = vmatprep.subr.bf16.mxu1 %v2957_v3 }
 0x411   :  { %v264_v55 = vpop.f32.mrb[0].mxu1 }
 0x412   :  { %v265_v56 = vadd.f32 %v3166_v54, %v264_v55  ;;  %v2271_v57 = vpop.f32.mrb[1].mxu1 }
 0x414   :  { %2786 = vtanh.f32 %v265_v56  ;;  %v2036_v59 = vmul.f32 -1.442695, %v265_v56 }
 0x416   :  { %2788 = vpow2.f32 %v2036_v59 }
 0x41e   :  { %v2787_v58 = vpop.eup %2786 }
 0x41f   :  { %281 = vrot.lane.b32.xlu0 %v2787_v58, %s2960_s13 }
 0x420   :  { %v2789_v60 = vpop.eup %2788 }
 0x421   :  { %v271_v61 = vadd.f32 1.0, %v2789_v60  ;;  %v2042_v60 = vld [vmem:[%s3585_s0 + $0x4] sm:$0x3] }
 0x423   :  { %2790 = vrcp.f32 %v271_v61 }
 0x42d   :  { %v2791_v62 = vpop.eup %2790 }
 0x42e   :  { %v279_v5 = vmul.f32 %v2791_v62, %v277_v1 }
 0x491   :  { %v282_v63 = vpop.permute.xlu0 %281 }
 0x492   :  { %v284_v0 = vmul.f32 %v2791_v62, %v282_v63 }
 0x494   :  { %286 = vrot.lane.b32.xlu0 %v284_v0, %s2959_s29 }
 0x506   :  { %v287_v6 = vpop.permute.xlu0 %286 }
 0x507   :  { %v3171_v8 = vadd.f32 %v287_v6, %v279_v5 }
 0x509   :  { %2792 = vtanh.f32 %v3171_v8 }
 0x513   :  { %v2793_v9 = vpop.eup %2792 }
 0x514   :  { %292 = vrot.lane.b32.xlu1 %v2793_v9, %s2960_s13 }
 0x586   :  { %v293_v11 = vpop.permute.xlu1 %292 }
 0x587   :  { %v3175_v12 = vmul.f32 %v2791_v62, %v293_v11 }
 0x589   :  { %303 = vrot.lane.b32.xlu0 %v3175_v12, %s2960_s13 }
 0x5fb   :  { %v304_v13 = vpop.permute.xlu0 %303 }
 0x5fc   :  { %v306_v14 = vsel %vm71_vm2, %v186_v52, %v304_v13 }
 0x5fd   :  { %2289 = vmatmul.mubr.msk.f32.vlgmr.msra.gmra.mrb[2].mxu0 %vm74_vm3, %v306_v14 }
 0x5fe   :  { %2610 = vmatpush3.bf16.msra.mxu0 %v3036_v4  ;;  %2326 = vmatprep.mubr.msk.f32.mxu0 %vm2958_vm1, %v2956_v2 }
 0x5ff   :  { %2611 = vmatprep.subr.bf16.mxu0 %v2957_v3 }
 0x602   :  { %2613 = vmatpush3.bf16.msra.mxu0 %v3050_v7 }
 0x603   :  { %2614 = vmatprep.subr.bf16.mxu0 %v2957_v3 }
 0x606   :  { %2616 = vmatpush3.bf16.msra.mxu0 %v3060_v10 }
 0x607   :  { %2617 = vmatprep.subr.bf16.mxu0 %v2957_v3 }
 0x60a   :  { %2619 = vmatpush3.bf16.msra.mxu0 %v3072_v15 }
 0x60b   :  { %2632 = vmatprep.subr.bf16.mxu0 %v2957_v3 }
 0x6d0   :  { %v378_v17 = vpop.f32.mrb[2].mxu0 }
 0x6d1   :  { %v382_v18 = vadd.f32 %v2037_v16, %v378_v17  ;;  %v2290_v19 = vpop.f32.mrb[3].mxu0 }
 0x6d3   :  { %v383_v21 = vadd.f32 %v3098_v20, %v382_v18 }
 0x6d5   :  { %2794 = vtanh.f32 %v383_v21  ;;  %v2039_v23 = vmul.f32 -1.442695, %v383_v21 }
 0x6d7   :  { %2796 = vpow2.f32 %v2039_v23 }
 0x6df   :  { %v2795_v22 = vpop.eup %2794 }
 0x6e0   :  { %393 = vrot.lane.b32.xlu1 %v2795_v22, %s2960_s13 }
 0x6e1   :  { %v2797_v24 = vpop.eup %2796 }
 0x6e2   :  { %v387_v25 = vadd.f32 1.0, %v2797_v24 }
 0x6e4   :  { %2798 = vrcp.f32 %v387_v25 }
 0x6ee   :  { %v2799_v26 = vpop.eup %2798 }
 0x6ef   :  { %v391_v29 = vmul.f32 %v2799_v26, %v3103_v35 }
 0x752   :  { %v394_v27 = vpop.permute.xlu1 %393 }
 0x753   :  { %v396_v28 = vmul.f32 %v2799_v26, %v394_v27 }
 0x755   :  { %398 = vrot.lane.b32.xlu0 %v396_v28, %s2959_s29 }
 0x7c7   :  { %v399_v30 = vpop.permute.xlu0 %398 }
 0x7c8   :  { %v3198_v31 = vadd.f32 %v399_v30, %v391_v29 }
 0x7ca   :  { %2800 = vtanh.f32 %v3198_v31 }
 0x7d4   :  { %v2801_v32 = vpop.eup %2800 }
 0x7d5   :  { %404 = vrot.lane.b32.xlu1 %v2801_v32, %s2960_s13 }
 0x847   :  { %v405_v33 = vpop.permute.xlu1 %404 }
 0x848   :  { %v407_v34 = vmul.f32 %v2799_v26, %v405_v33 }
 0x84a   :  { %409 = vrot.lane.b32.xlu0 %v407_v34, %s2959_s29 }
 0x8bc   :  { %v410_v36 = vpop.permute.xlu0 %409 }
 0x8bd   :  { %v412_v37 = vsel %vm71_vm2, %v410_v36, %v304_v13  ;;  %510 = vst.msk [vmem:[#allocation6 + $0x2] sm:$0x3] %vm40_vm0, %v410_v36 }
 0x8be   :  { %2308 = vmatmul.mubr.msk.f32.vlgmr.msra.gmra.mrb[2].mxu1 %vm74_vm3, %v412_v37 }
 0x8bf   :  { %2622 = vmatpush3.bf16.msra.mxu1 %v3115_v39  ;;  %2345 = vmatprep.mubr.msk.f32.mxu1 %vm2958_vm1, %v2956_v2 }
 0x8c0   :  { %2623 = vmatprep.subr.bf16.mxu1 %v2957_v3 }
 0x8c3   :  { %2625 = vmatpush3.bf16.msra.mxu1 %v3121_v41 }
 0x8c4   :  { %2626 = vmatprep.subr.bf16.mxu1 %v2957_v3 }
 0x8c7   :  { %2628 = vmatpush3.bf16.msra.mxu1 %v3131_v44 }
 0x8c8   :  { %2629 = vmatprep.subr.bf16.mxu1 %v2957_v3 }
 0x8cb   :  { %2631 = vmatpush3.bf16.msra.mxu1 %v3142_v48 }
 0x8cc   :  { %2644 = vmatprep.subr.bf16.mxu1 %v2957_v3 }
 0x991   :  { %v482_v35 = vpop.f32.mrb[2].mxu1 }
 0x992   :  { %v483_v38 = vadd.f32 %v3166_v54, %v482_v35  ;;  %v2309_v40 = vpop.f32.mrb[3].mxu1 }
 0x994   :  { %2802 = vtanh.f32 %v483_v38  ;;  %v2041_v43 = vmul.f32 -1.442695, %v483_v38 }
 0x996   :  { %2804 = vpow2.f32 %v2041_v43 }
 0x99e   :  { %v2803_v42 = vpop.eup %2802 }
 0x99f   :  { %495 = vrot.lane.b32.xlu1 %v2803_v42, %s2960_s13 }
 0x9a0   :  { %v2805_v45 = vpop.eup %2804 }
 0x9a1   :  { %v489_v46 = vadd.f32 1.0, %v2805_v45  ;;  %v2047_v45 = vld [vmem:[%s3585_s0 + $0x6] sm:$0x3] }
 0x9a3   :  { %2806 = vrcp.f32 %v489_v46 }
 0x9ad   :  { %v2807_v47 = vpop.eup %2806 }
 0x9ae   :  { %v493_v51 = vmul.f32 %v2807_v47, %v3171_v8 }
 0xa11   :  { %v496_v49 = vpop.permute.xlu1 %495 }
 0xa12   :  { %v498_v50 = vmul.f32 %v2807_v47, %v496_v49 }
 0xa14   :  { %500 = vrot.lane.b32.xlu0 %v498_v50, %s2959_s29 }
 0xa86   :  { %v501_v52 = vpop.permute.xlu0 %500 }
 0xa87   :  { %v3220_v53 = vadd.f32 %v501_v52, %v493_v51 }
 0xa89   :  { %2808 = vtanh.f32 %v3220_v53 }
 0xa93   :  { %v2809_v55 = vpop.eup %2808 }
 0xa94   :  { %506 = vrot.lane.b32.xlu1 %v2809_v55, %s2960_s13 }
 0xb06   :  { %v507_v56 = vpop.permute.xlu1 %506 }
 0xb07   :  { %v3224_v57 = vmul.f32 %v2807_v47, %v507_v56 }
 0xb09   :  { %516 = vrot.lane.b32.xlu0 %v3224_v57, %s2960_s13 }
 0xb7b   :  { %v517_v58 = vpop.permute.xlu0 %516 }
 0xb7c   :  { %v519_v59 = vsel %vm71_vm2, %v410_v36, %v517_v58 }
 0xb7d   :  { %2327 = vmatmul.mubr.msk.f32.vlgmr.msra.gmra.mrb[4].mxu0 %vm74_vm3, %v519_v59 }
 0xb7e   :  { %2634 = vmatpush3.bf16.msra.mxu0 %v3036_v4  ;;  %2364 = vmatprep.mubr.msk.f32.mxu0 %vm2958_vm1, %v2956_v2 }
 0xb7f   :  { %2635 = vmatprep.subr.bf16.mxu0 %v2957_v3 }
 0xb82   :  { %2637 = vmatpush3.bf16.msra.mxu0 %v3050_v7 }
 0xb83   :  { %2638 = vmatprep.subr.bf16.mxu0 %v2957_v3 }
 0xb86   :  { %2640 = vmatpush3.bf16.msra.mxu0 %v3060_v10 }
 0xb87   :  { %2641 = vmatprep.subr.bf16.mxu0 %v2957_v3 }
 0xb8a   :  { %2643 = vmatpush3.bf16.msra.mxu0 %v3072_v15 }
 0xb8b   :  { %2656 = vmatprep.subr.bf16.mxu0 %v2957_v3 }
 0xc50   :  { %v591_v61 = vpop.f32.mrb[4].mxu0 }
 0xc51   :  { %v595_v62 = vadd.f32 %v2042_v60, %v591_v61  ;;  %v2328_v63 = vpop.f32.mrb[5].mxu0 }
 0xc53   :  { %v596_v0 = vadd.f32 %v3098_v20, %v595_v62 }
 0xc55   :  { %2810 = vtanh.f32 %v596_v0  ;;  %v2044_v5 = vmul.f32 -1.442695, %v596_v0 }
 0xc57   :  { %2812 = vpow2.f32 %v2044_v5 }
 0xc5f   :  { %v2811_v1 = vpop.eup %2810 }
 0xc60   :  { %606 = vrot.lane.b32.xlu1 %v2811_v1, %s2960_s13 }
 0xc61   :  { %v2813_v6 = vpop.eup %2812 }
 0xc62   :  { %v600_v8 = vadd.f32 1.0, %v2813_v6 }
 0xc64   :  { %2814 = vrcp.f32 %v600_v8 }
 0xc6e   :  { %v2815_v9 = vpop.eup %2814 }
 0xc6f   :  { %v604_v14 = vmul.f32 %v2815_v9, %v3198_v31 }
 0xcd2   :  { %v607_v11 = vpop.permute.xlu1 %606 }
 0xcd3   :  { %v609_v13 = vmul.f32 %v2815_v9, %v607_v11 }
 0xcd5   :  { %611 = vrot.lane.b32.xlu0 %v609_v13, %s2959_s29 }
 0xd47   :  { %v612_v16 = vpop.permute.xlu0 %611 }
 0xd48   :  { %v3247_v17 = vadd.f32 %v612_v16, %v604_v14 }
 0xd4a   :  { %2816 = vtanh.f32 %v3247_v17 }
 0xd54   :  { %v2817_v18 = vpop.eup %2816 }
 0xd55   :  { %617 = vrot.lane.b32.xlu1 %v2817_v18, %s2960_s13 }
 0xdc7   :  { %v618_v19 = vpop.permute.xlu1 %617 }
 0xdc8   :  { %v620_v21 = vmul.f32 %v2815_v9, %v618_v19 }
 0xdca   :  { %622 = vrot.lane.b32.xlu0 %v620_v21, %s2959_s29 }
 0xe3c   :  { %v623_v22 = vpop.permute.xlu0 %622 }
 0xe3d   :  { %v625_v23 = vsel %vm71_vm2, %v623_v22, %v517_v58  ;;  %723 = vst.msk [vmem:[#allocation6 + $0x4] sm:$0x3] %vm40_vm0, %v623_v22 }
 0xe3e   :  { %2346 = vmatmul.mubr.msk.f32.vlgmr.msra.gmra.mrb[4].mxu1 %vm74_vm3, %v625_v23 }
 0xe3f   :  { %2646 = vmatpush3.bf16.msra.mxu1 %v3115_v39  ;;  %2383 = vmatprep.mubr.msk.f32.mxu1 %vm2958_vm1, %v2956_v2 }
 0xe40   :  { %2647 = vmatprep.subr.bf16.mxu1 %v2957_v3 }
 0xe43   :  { %2649 = vmatpush3.bf16.msra.mxu1 %v3121_v41 }
 0xe44   :  { %2650 = vmatprep.subr.bf16.mxu1 %v2957_v3 }
 0xe47   :  { %2652 = vmatpush3.bf16.msra.mxu1 %v3131_v44 }
 0xe48   :  { %2653 = vmatprep.subr.bf16.mxu1 %v2957_v3 }
 0xe4b   :  { %2655 = vmatpush3.bf16.msra.mxu1 %v3142_v48 }
 0xe4c   :  { %2668 = vmatprep.subr.bf16.mxu1 %v2957_v3 }
 0xf11   :  { %v695_v24 = vpop.f32.mrb[4].mxu1 }
 0xf12   :  { %v696_v25 = vadd.f32 %v3166_v54, %v695_v24  ;;  %v2347_v26 = vpop.f32.mrb[5].mxu1 }
 0xf14   :  { %2818 = vtanh.f32 %v696_v25  ;;  %v2046_v28 = vmul.f32 -1.442695, %v696_v25 }
 0xf16   :  { %2820 = vpow2.f32 %v2046_v28 }
 0xf1e   :  { %v2819_v27 = vpop.eup %2818 }
 0xf1f   :  { %708 = vrot.lane.b32.xlu1 %v2819_v27, %s2960_s13 }
 0xf20   :  { %v2821_v29 = vpop.eup %2820 }
 0xf21   :  { %v702_v30 = vadd.f32 1.0, %v2821_v29 }
 0xf23   :  { %2822 = vrcp.f32 %v702_v30  ;;  %v2052_v30 = vld [vmem:[%s3585_s0 + $0x8] sm:$0x3] }
 0xf2d   :  { %v2823_v31 = vpop.eup %2822 }
 0xf2e   :  { %v706_v34 = vmul.f32 %v2823_v31, %v3220_v53 }
 0xf91   :  { %v709_v32 = vpop.permute.xlu1 %708 }
 0xf92   :  { %v711_v33 = vmul.f32 %v2823_v31, %v709_v32 }
 0xf94   :  { %713 = vrot.lane.b32.xlu0 %v711_v33, %s2959_s29 }
0x1006   :  { %v714_v36 = vpop.permute.xlu0 %713 }
0x1007   :  { %v3269_v37 = vadd.f32 %v714_v36, %v706_v34 }
0x1009   :  { %2824 = vtanh.f32 %v3269_v37 }
0x1013   :  { %v2825_v35 = vpop.eup %2824 }
0x1014   :  { %719 = vrot.lane.b32.xlu1 %v2825_v35, %s2960_s13 }
0x1086   :  { %v720_v38 = vpop.permute.xlu1 %719 }
0x1087   :  { %v3273_v40 = vmul.f32 %v2823_v31, %v720_v38 }
0x1089   :  { %729 = vrot.lane.b32.xlu0 %v3273_v40, %s2960_s13 }
0x10fb   :  { %v730_v42 = vpop.permute.xlu0 %729 }
0x10fc   :  { %v732_v43 = vsel %vm71_vm2, %v623_v22, %v730_v42 }
0x10fd   :  { %2365 = vmatmul.mubr.msk.f32.vlgmr.msra.gmra.mrb[6].mxu0 %vm74_vm3, %v732_v43 }
0x10fe   :  { %2658 = vmatpush3.bf16.msra.mxu0 %v3036_v4  ;;  %2402 = vmatprep.mubr.msk.f32.mxu0 %vm2958_vm1, %v2956_v2 }
0x10ff   :  { %2659 = vmatprep.subr.bf16.mxu0 %v2957_v3 }
0x1102   :  { %2661 = vmatpush3.bf16.msra.mxu0 %v3050_v7 }
0x1103   :  { %2662 = vmatprep.subr.bf16.mxu0 %v2957_v3 }
0x1106   :  { %2664 = vmatpush3.bf16.msra.mxu0 %v3060_v10 }
0x1107   :  { %2665 = vmatprep.subr.bf16.mxu0 %v2957_v3 }
0x110a   :  { %2667 = vmatpush3.bf16.msra.mxu0 %v3072_v15 }
0x110b   :  { %2680 = vmatprep.subr.bf16.mxu0 %v2957_v3 }
0x11d0   :  { %v804_v46 = vpop.f32.mrb[6].mxu0 }
0x11d1   :  { %v808_v47 = vadd.f32 %v2047_v45, %v804_v46  ;;  %v2366_v49 = vpop.f32.mrb[7].mxu0 }
0x11d3   :  { %v809_v50 = vadd.f32 %v3098_v20, %v808_v47 }
0x11d5   :  { %2826 = vtanh.f32 %v809_v50  ;;  %v2049_v52 = vmul.f32 -1.442695, %v809_v50 }
0x11d7   :  { %2828 = vpow2.f32 %v2049_v52 }
0x11df   :  { %v2827_v51 = vpop.eup %2826 }
0x11e0   :  { %819 = vrot.lane.b32.xlu1 %v2827_v51, %s2960_s13 }
0x11e1   :  { %v2829_v53 = vpop.eup %2828 }
0x11e2   :  { %v813_v55 = vadd.f32 1.0, %v2829_v53 }
0x11e4   :  { %2830 = vrcp.f32 %v813_v55 }
0x11ee   :  { %v2831_v56 = vpop.eup %2830 }
0x11ef   :  { %v817_v60 = vmul.f32 %v2831_v56, %v3247_v17 }
0x1252   :  { %v820_v58 = vpop.permute.xlu1 %819 }
0x1253   :  { %v822_v59 = vmul.f32 %v2831_v56, %v820_v58 }
0x1255   :  { %824 = vrot.lane.b32.xlu0 %v822_v59, %s2959_s29 }
0x12c7   :  { %v825_v61 = vpop.permute.xlu0 %824 }
0x12c8   :  { %v3296_v62 = vadd.f32 %v825_v61, %v817_v60 }
0x12ca   :  { %2832 = vtanh.f32 %v3296_v62 }
0x12d4   :  { %v2833_v63 = vpop.eup %2832 }
0x12d5   :  { %830 = vrot.lane.b32.xlu1 %v2833_v63, %s2960_s13 }
0x1347   :  { %v831_v0 = vpop.permute.xlu1 %830 }
0x1348   :  { %v833_v1 = vmul.f32 %v2831_v56, %v831_v0 }
0x134a   :  { %835 = vrot.lane.b32.xlu0 %v833_v1, %s2959_s29 }
0x13bc   :  { %v836_v5 = vpop.permute.xlu0 %835 }
0x13bd   :  { %v838_v6 = vsel %vm71_vm2, %v836_v5, %v730_v42  ;;  %936 = vst.msk [vmem:[#allocation6 + $0x6] sm:$0x3] %vm40_vm0, %v836_v5 }
0x13be   :  { %2384 = vmatmul.mubr.msk.f32.vlgmr.msra.gmra.mrb[6].mxu1 %vm74_vm3, %v838_v6 }
0x13bf   :  { %2670 = vmatpush3.bf16.msra.mxu1 %v3115_v39  ;;  %2421 = vmatprep.mubr.msk.f32.mxu1 %vm2958_vm1, %v2956_v2 }
0x13c0   :  { %2671 = vmatprep.subr.bf16.mxu1 %v2957_v3 }
0x13c3   :  { %2673 = vmatpush3.bf16.msra.mxu1 %v3121_v41 }
0x13c4   :  { %2674 = vmatprep.subr.bf16.mxu1 %v2957_v3 }
0x13c7   :  { %2676 = vmatpush3.bf16.msra.mxu1 %v3131_v44 }
0x13c8   :  { %2677 = vmatprep.subr.bf16.mxu1 %v2957_v3 }
0x13cb   :  { %2679 = vmatpush3.bf16.msra.mxu1 %v3142_v48 }
0x13cc   :  { %2692 = vmatprep.subr.bf16.mxu1 %v2957_v3 }
0x1491   :  { %v908_v8 = vpop.f32.mrb[6].mxu1 }
0x1492   :  { %v909_v9 = vadd.f32 %v3166_v54, %v908_v8  ;;  %v2385_v11 = vpop.f32.mrb[7].mxu1 }
0x1494   :  { %2834 = vtanh.f32 %v909_v9  ;;  %v2051_v14 = vmul.f32 -1.442695, %v909_v9 }
0x1496   :  { %2836 = vpow2.f32 %v2051_v14 }
0x149e   :  { %v2835_v13 = vpop.eup %2834 }
0x149f   :  { %921 = vrot.lane.b32.xlu1 %v2835_v13, %s2960_s13 }
0x14a0   :  { %v2837_v16 = vpop.eup %2836 }
0x14a1   :  { %v915_v17 = vadd.f32 1.0, %v2837_v16 }
0x14a3   :  { %2838 = vrcp.f32 %v915_v17 }
0x14ad   :  { %v2839_v18 = vpop.eup %2838 }
0x14ae   :  { %v919_v22 = vmul.f32 %v2839_v18, %v3269_v37 }
0x1511   :  { %v922_v19 = vpop.permute.xlu1 %921 }
0x1512   :  { %v924_v21 = vmul.f32 %v2839_v18, %v922_v19 }
0x1514   :  { %926 = vrot.lane.b32.xlu0 %v924_v21, %s2959_s29 }
0x1586   :  { %v927_v23 = vpop.permute.xlu0 %926 }
0x1587   :  { %v3318_v24 = vadd.f32 %v927_v23, %v919_v22 }
0x1589   :  { %2840 = vtanh.f32 %v3318_v24 }
0x1593   :  { %v2841_v25 = vpop.eup %2840 }
0x1594   :  { %932 = vrot.lane.b32.xlu1 %v2841_v25, %s2960_s13 }
0x1606   :  { %v933_v26 = vpop.permute.xlu1 %932 }
0x1607   :  { %v3322_v27 = vmul.f32 %v2839_v18, %v933_v26  ;;  %v2057_v18 = vld [vmem:[%s3585_s0 + $0xa] sm:$0x3] }
0x1609   :  { %942 = vrot.lane.b32.xlu0 %v3322_v27, %s2960_s13 }
0x167b   :  { %v943_v28 = vpop.permute.xlu0 %942 }
0x167c   :  { %v945_v29 = vsel %vm71_vm2, %v836_v5, %v943_v28 }
0x167d   :  { %2403 = vmatmul.mubr.msk.f32.vlgmr.msra.gmra.mrb[8].mxu0 %vm74_vm3, %v945_v29 }
0x167e   :  { %2682 = vmatpush3.bf16.msra.mxu0 %v3036_v4  ;;  %2440 = vmatprep.mubr.msk.f32.mxu0 %vm2958_vm1, %v2956_v2 }
0x167f   :  { %2683 = vmatprep.subr.bf16.mxu0 %v2957_v3 }
0x1682   :  { %2685 = vmatpush3.bf16.msra.mxu0 %v3050_v7 }
0x1683   :  { %2686 = vmatprep.subr.bf16.mxu0 %v2957_v3 }
0x1686   :  { %2688 = vmatpush3.bf16.msra.mxu0 %v3060_v10 }
0x1687   :  { %2689 = vmatprep.subr.bf16.mxu0 %v2957_v3 }
0x168a   :  { %2691 = vmatpush3.bf16.msra.mxu0 %v3072_v15 }
0x168b   :  { %2704 = vmatprep.subr.bf16.mxu0 %v2957_v3 }
0x1750   :  { %v1017_v31 = vpop.f32.mrb[8].mxu0 }
0x1751   :  { %v1021_v32 = vadd.f32 %v2052_v30, %v1017_v31  ;;  %v2404_v33 = vpop.f32.mrb[9].mxu0 }
0x1753   :  { %v1022_v34 = vadd.f32 %v3098_v20, %v1021_v32 }
0x1755   :  { %2842 = vtanh.f32 %v1022_v34  ;;  %v2054_v37 = vmul.f32 -1.442695, %v1022_v34 }
0x1757   :  { %2844 = vpow2.f32 %v2054_v37 }
0x175f   :  { %v2843_v36 = vpop.eup %2842 }
0x1760   :  { %1032 = vrot.lane.b32.xlu1 %v2843_v36, %s2960_s13 }
0x1761   :  { %v2845_v35 = vpop.eup %2844 }
0x1762   :  { %v1026_v38 = vadd.f32 1.0, %v2845_v35 }
0x1764   :  { %2846 = vrcp.f32 %v1026_v38 }
0x176e   :  { %v2847_v42 = vpop.eup %2846 }
0x176f   :  { %v1030_v46 = vmul.f32 %v2847_v42, %v3296_v62 }
0x17d2   :  { %v1033_v43 = vpop.permute.xlu1 %1032 }
0x17d3   :  { %v1035_v45 = vmul.f32 %v2847_v42, %v1033_v43 }
0x17d5   :  { %1037 = vrot.lane.b32.xlu0 %v1035_v45, %s2959_s29 }
0x1847   :  { %v1038_v47 = vpop.permute.xlu0 %1037 }
0x1848   :  { %v3345_v49 = vadd.f32 %v1038_v47, %v1030_v46 }
0x184a   :  { %2848 = vtanh.f32 %v3345_v49 }
0x1854   :  { %v2849_v50 = vpop.eup %2848 }
0x1855   :  { %1043 = vrot.lane.b32.xlu1 %v2849_v50, %s2960_s13 }
0x18c7   :  { %v1044_v51 = vpop.permute.xlu1 %1043 }
0x18c8   :  { %v1046_v52 = vmul.f32 %v2847_v42, %v1044_v51 }
0x18ca   :  { %1048 = vrot.lane.b32.xlu0 %v1046_v52, %s2959_s29 }
0x193c   :  { %v1049_v53 = vpop.permute.xlu0 %1048 }
0x193d   :  { %v1051_v55 = vsel %vm71_vm2, %v1049_v53, %v943_v28  ;;  %1149 = vst.msk [vmem:[#allocation6 + $0x8] sm:$0x3] %vm40_vm0, %v1049_v53 }
0x193e   :  { %2422 = vmatmul.mubr.msk.f32.vlgmr.msra.gmra.mrb[8].mxu1 %vm74_vm3, %v1051_v55 }
0x193f   :  { %2694 = vmatpush3.bf16.msra.mxu1 %v3115_v39  ;;  %2459 = vmatprep.mubr.msk.f32.mxu1 %vm2958_vm1, %v2956_v2 }
0x1940   :  { %2695 = vmatprep.subr.bf16.mxu1 %v2957_v3 }
0x1943   :  { %2697 = vmatpush3.bf16.msra.mxu1 %v3121_v41 }
0x1944   :  { %2698 = vmatprep.subr.bf16.mxu1 %v2957_v3 }
0x1947   :  { %2700 = vmatpush3.bf16.msra.mxu1 %v3131_v44 }
0x1948   :  { %2701 = vmatprep.subr.bf16.mxu1 %v2957_v3 }
0x194b   :  { %2703 = vmatpush3.bf16.msra.mxu1 %v3142_v48 }
0x194c   :  { %2716 = vmatprep.subr.bf16.mxu1 %v2957_v3 }
0x1a11   :  { %v1121_v56 = vpop.f32.mrb[8].mxu1 }
0x1a12   :  { %v1122_v58 = vadd.f32 %v3166_v54, %v1121_v56  ;;  %v2423_v59 = vpop.f32.mrb[9].mxu1 }
0x1a14   :  { %2850 = vtanh.f32 %v1122_v58  ;;  %v2056_v61 = vmul.f32 -1.442695, %v1122_v58 }
0x1a16   :  { %2852 = vpow2.f32 %v2056_v61 }
0x1a1e   :  { %v2851_v60 = vpop.eup %2850 }
0x1a1f   :  { %1134 = vrot.lane.b32.xlu1 %v2851_v60, %s2960_s13 }
0x1a20   :  { %v2853_v62 = vpop.eup %2852 }
0x1a21   :  { %v1128_v63 = vadd.f32 1.0, %v2853_v62 }
0x1a23   :  { %2854 = vrcp.f32 %v1128_v63 }
0x1a2d   :  { %v2855_v0 = vpop.eup %2854 }
0x1a2e   :  { %v1132_v6 = vmul.f32 %v2855_v0, %v3318_v24 }
0x1a91   :  { %v1135_v1 = vpop.permute.xlu1 %1134 }
0x1a92   :  { %v1137_v5 = vmul.f32 %v2855_v0, %v1135_v1  ;;  %v2062_v1 = vld [vmem:[%s3585_s0 + $0xc] sm:$0x3] }
0x1a94   :  { %1139 = vrot.lane.b32.xlu0 %v1137_v5, %s2959_s29 }
0x1b06   :  { %v1140_v8 = vpop.permute.xlu0 %1139 }
0x1b07   :  { %v3367_v9 = vadd.f32 %v1140_v8, %v1132_v6 }
0x1b09   :  { %2856 = vtanh.f32 %v3367_v9 }
0x1b13   :  { %v2857_v11 = vpop.eup %2856 }
0x1b14   :  { %1145 = vrot.lane.b32.xlu1 %v2857_v11, %s2960_s13 }
0x1b86   :  { %v1146_v13 = vpop.permute.xlu1 %1145 }
0x1b87   :  { %v3371_v14 = vmul.f32 %v2855_v0, %v1146_v13 }
0x1b89   :  { %1155 = vrot.lane.b32.xlu0 %v3371_v14, %s2960_s13 }
0x1bfb   :  { %v1156_v16 = vpop.permute.xlu0 %1155 }
0x1bfc   :  { %v1158_v17 = vsel %vm71_vm2, %v1049_v53, %v1156_v16 }
0x1bfd   :  { %2441 = vmatmul.mubr.msk.f32.vlgmr.msra.gmra.mrb[10].mxu0 %vm74_vm3, %v1158_v17 }
0x1bfe   :  { %2706 = vmatpush3.bf16.msra.mxu0 %v3036_v4  ;;  %2478 = vmatprep.mubr.msk.f32.mxu0 %vm2958_vm1, %v2956_v2 }
0x1bff   :  { %2707 = vmatprep.subr.bf16.mxu0 %v2957_v3 }
0x1c02   :  { %2709 = vmatpush3.bf16.msra.mxu0 %v3050_v7 }
0x1c03   :  { %2710 = vmatprep.subr.bf16.mxu0 %v2957_v3 }
0x1c06   :  { %2712 = vmatpush3.bf16.msra.mxu0 %v3060_v10 }
0x1c07   :  { %2713 = vmatprep.subr.bf16.mxu0 %v2957_v3 }
0x1c0a   :  { %2715 = vmatpush3.bf16.msra.mxu0 %v3072_v15 }
0x1c0b   :  { %2728 = vmatprep.subr.bf16.mxu0 %v2957_v3 }
0x1cd0   :  { %v1230_v19 = vpop.f32.mrb[10].mxu0 }
0x1cd1   :  { %v1234_v21 = vadd.f32 %v2057_v18, %v1230_v19  ;;  %v2442_v22 = vpop.f32.mrb[11].mxu0 }
0x1cd3   :  { %v1235_v23 = vadd.f32 %v3098_v20, %v1234_v21 }
0x1cd5   :  { %2858 = vtanh.f32 %v1235_v23  ;;  %v2059_v25 = vmul.f32 -1.442695, %v1235_v23 }
0x1cd7   :  { %2860 = vpow2.f32 %v2059_v25 }
0x1cdf   :  { %v2859_v24 = vpop.eup %2858 }
0x1ce0   :  { %1245 = vrot.lane.b32.xlu1 %v2859_v24, %s2960_s13 }
0x1ce1   :  { %v2861_v26 = vpop.eup %2860 }
0x1ce2   :  { %v1239_v28 = vadd.f32 1.0, %v2861_v26 }
0x1ce4   :  { %2862 = vrcp.f32 %v1239_v28 }
0x1cee   :  { %v2863_v29 = vpop.eup %2862 }
0x1cef   :  { %v1243_v32 = vmul.f32 %v2863_v29, %v3345_v49 }
0x1d52   :  { %v1246_v30 = vpop.permute.xlu1 %1245 }
0x1d53   :  { %v1248_v31 = vmul.f32 %v2863_v29, %v1246_v30 }
0x1d55   :  { %1250 = vrot.lane.b32.xlu0 %v1248_v31, %s2959_s29 }
0x1dc7   :  { %v1251_v33 = vpop.permute.xlu0 %1250 }
0x1dc8   :  { %v3394_v34 = vadd.f32 %v1251_v33, %v1243_v32 }
0x1dca   :  { %2864 = vtanh.f32 %v3394_v34 }
0x1dd4   :  { %v2865_v36 = vpop.eup %2864 }
0x1dd5   :  { %1256 = vrot.lane.b32.xlu1 %v2865_v36, %s2960_s13 }
0x1e47   :  { %v1257_v37 = vpop.permute.xlu1 %1256 }
0x1e48   :  { %v1259_v35 = vmul.f32 %v2863_v29, %v1257_v37 }
0x1e4a   :  { %1261 = vrot.lane.b32.xlu0 %v1259_v35, %s2959_s29  ;;  %v1806_v35 = vld [vmem:[#allocation6] sm:$0xff] }
0x1ebc   :  { %v1262_v38 = vpop.permute.xlu0 %1261 }
0x1ebd   :  { %v1264_v42 = vsel %vm71_vm2, %v1262_v38, %v1156_v16  ;;  %1362 = vst.msk [vmem:[#allocation6 + $0xa] sm:$0x3] %vm40_vm0, %v1262_v38 }
0x1ebe   :  { %2460 = vmatmul.mubr.msk.f32.vlgmr.msra.gmra.mrb[10].mxu1 %vm74_vm3, %v1264_v42 }
0x1ebf   :  { %2718 = vmatpush3.bf16.msra.mxu1 %v3115_v39  ;;  %2497 = vmatprep.mubr.msk.f32.mxu1 %vm2958_vm1, %v2956_v2 }
0x1ec0   :  { %2719 = vmatprep.subr.bf16.mxu1 %v2957_v3 }
0x1ec3   :  { %2721 = vmatpush3.bf16.msra.mxu1 %v3121_v41 }
0x1ec4   :  { %2722 = vmatprep.subr.bf16.mxu1 %v2957_v3 }
0x1ec7   :  { %2724 = vmatpush3.bf16.msra.mxu1 %v3131_v44 }
0x1ec8   :  { %2725 = vmatprep.subr.bf16.mxu1 %v2957_v3 }
0x1ecb   :  { %2727 = vmatpush3.bf16.msra.mxu1 %v3142_v48 }
0x1ecc   :  { %2740 = vmatprep.subr.bf16.mxu1 %v2957_v3 }
0x1f91   :  { %v1334_v43 = vpop.f32.mrb[10].mxu1 }
0x1f92   :  { %v1335_v45 = vadd.f32 %v3166_v54, %v1334_v43  ;;  %v2461_v46 = vpop.f32.mrb[11].mxu1 }
0x1f93   :  { %v2906_v46 = vld [vmem:[%s3587_s2] ss:$0 sm:$0xff] }
0x1f94   :  { %2866 = vtanh.f32 %v1335_v45  ;;  %v2061_v49 = vmul.f32 -1.442695, %v1335_v45 }
0x1f96   :  { %2868 = vpow2.f32 %v2061_v49 }
0x1f9e   :  { %v2867_v47 = vpop.eup %2866 }
0x1f9f   :  { %1347 = vrot.lane.b32.xlu1 %v2867_v47, %s2960_s13 }
0x1fa0   :  { %v2869_v50 = vpop.eup %2868 }
0x1fa1   :  { %v1341_v51 = vadd.f32 1.0, %v2869_v50 }
0x1fa3   :  { %2870 = vrcp.f32 %v1341_v51 }
0x1fad   :  { %v2871_v52 = vpop.eup %2870 }
0x1fae   :  { %v1345_v56 = vmul.f32 %v2871_v52, %v3367_v9 }
0x2011   :  { %v1348_v53 = vpop.permute.xlu1 %1347 }
0x2012   :  { %v1350_v55 = vmul.f32 %v2871_v52, %v1348_v53 }
0x2014   :  { %1352 = vrot.lane.b32.xlu0 %v1350_v55, %s2959_s29 }
0x2086   :  { %v1353_v58 = vpop.permute.xlu0 %1352 }
0x2087   :  { %v3416_v59 = vadd.f32 %v1353_v58, %v1345_v56 }
0x2089   :  { %2872 = vtanh.f32 %v3416_v59 }
0x2093   :  { %v2873_v60 = vpop.eup %2872 }
0x2094   :  { %1358 = vrot.lane.b32.xlu1 %v2873_v60, %s2960_s13 }
0x2106   :  { %v1359_v61 = vpop.permute.xlu1 %1358 }
0x2107   :  { %v3420_v62 = vmul.f32 %v2871_v52, %v1359_v61 }
0x2109   :  { %1368 = vrot.lane.b32.xlu0 %v3420_v62, %s2960_s13 }
0x217b   :  { %v1369_v63 = vpop.permute.xlu0 %1368 }
0x217c   :  { %v1371_v0 = vsel %vm71_vm2, %v1262_v38, %v1369_v63  ;;  %v2067_v38 = vld [vmem:[%s3585_s0 + $0xe] sm:$0x3] }
0x217d   :  { %2479 = vmatmul.mubr.msk.f32.vlgmr.msra.gmra.mrb[12].mxu0 %vm74_vm3, %v1371_v0  ;;  %v1809_v0 = vld [vmem:[%s3590_s5 + $0x8] sm:$0xff] }
0x217e   :  { %2730 = vmatpush3.bf16.msra.mxu0 %v3036_v4  ;;  %2516 = vmatprep.mubr.msk.f32.mxu0 %vm2958_vm1, %v2956_v2 }
0x217f   :  { %2731 = vmatprep.subr.bf16.mxu0 %v2957_v3 }
0x2182   :  { %2733 = vmatpush3.bf16.msra.mxu0 %v3050_v7 }
0x2183   :  { %2734 = vmatprep.subr.bf16.mxu0 %v2957_v3 }
0x2186   :  { %2736 = vmatpush3.bf16.msra.mxu0 %v3060_v10 }
0x2187   :  { %2737 = vmatprep.subr.bf16.mxu0 %v2957_v3 }
0x218a   :  { %2739 = vmatpush3.bf16.msra.mxu0 %v3072_v15 }
0x2250   :  { %v1443_v4 = vpop.f32.mrb[12].mxu0 }
0x2251   :  { %v1447_v5 = vadd.f32 %v2062_v1, %v1443_v4  ;;  %v2480_v6 = vpop.f32.mrb[13].mxu0  ;;  %v1810_v4 = vld [vmem:[%s3590_s5 + $0x10] sm:$0xff] }
0x2253   :  { %v1448_v8 = vadd.f32 %v3098_v20, %v1447_v5  ;;  %v1811_v5 = vld [vmem:[%s3590_s5 + $0x18] sm:$0xff] }
0x2254   :  { %v2756_v6 = vpack.c.bf16 %v1811_v5, %v1810_v4 }
0x2255   :  { %2874 = vtanh.f32 %v1448_v8  ;;  %v2064_v7 = vmul.f32 -1.442695, %v1448_v8 }
0x2257   :  { %2876 = vpow2.f32 %v2064_v7 }
0x225f   :  { %v2875_v9 = vpop.eup %2874 }
0x2260   :  { %1458 = vrot.lane.b32.xlu1 %v2875_v9, %s2960_s13 }
0x2261   :  { %v2877_v10 = vpop.eup %2876 }
0x2262   :  { %v1452_v11 = vadd.f32 1.0, %v2877_v10 }
0x2264   :  { %2878 = vrcp.f32 %v1452_v11 }
0x226e   :  { %v2879_v13 = vpop.eup %2878 }
0x226f   :  { %v1456_v17 = vmul.f32 %v2879_v13, %v3394_v34 }
0x22d2   :  { %v1459_v15 = vpop.permute.xlu1 %1458 }
0x22d3   :  { %v1461_v16 = vmul.f32 %v2879_v13, %v1459_v15  ;;  %v2907_v15 = vld [vmem:[%s3589_s4] ss:$0 sm:$0xff]  ;;  %s2961_s4 = smov 96  }
0x22d5   :  { %1463 = vrot.lane.b32.xlu0 %v1461_v16, %s2959_s29 }
0x2347   :  { %v1464_v18 = vpop.permute.xlu0 %1463 }
0x2348   :  { %v3442_v19 = vadd.f32 %v1464_v18, %v1456_v17  ;;  %v2072_v18 = vld [vmem:[%s3591_s6] ss:$0 sm:$0xff] }
0x234a   :  { %2880 = vtanh.f32 %v3442_v19 }
0x2354   :  { %v2881_v20 = vpop.eup %2880 }
0x2355   :  { %1469 = vrot.lane.b32.xlu1 %v2881_v20, %s2960_s13 }
0x23c7   :  { %v1470_v21 = vpop.permute.xlu1 %1469 }
0x23c8   :  { %v1472_v22 = vmul.f32 %v2879_v13, %v1470_v21 }
0x23ca   :  { %1474 = vrot.lane.b32.xlu0 %v1472_v22, %s2959_s29 }
0x243c   :  { %v1475_v23 = vpop.permute.xlu0 %1474 }
0x243d   :  { %v1477_v24 = vsel %vm71_vm2, %v1475_v23, %v1369_v63  ;;  %1575 = vst.msk [vmem:[#allocation6 + $0xc] sm:$0x3] %vm40_vm0, %v1475_v23  ;;  %v1808_v63 = vld [vmem:[%s3590_s5] sm:$0xff] }
0x243e   :  { %2498 = vmatmul.mubr.msk.f32.vlgmr.msra.gmra.mrb[12].mxu1 %vm74_vm3, %v1477_v24  ;;  %v2752_v1 = vpack.c.bf16 %v1809_v0, %v1808_v63 }
0x243f   :  { %2742 = vmatpush3.bf16.msra.mxu1 %v3115_v39  ;;  %2535 = vmatprep.mubr.msk.f32.mxu1 %vm2958_vm1, %v2956_v2 }
0x2440   :  { %2743 = vmatprep.subr.bf16.mxu1 %v2957_v3  ;;  %2753 = vmatprep.subr.bf16.mxu0 %v2752_v1 }
0x2443   :  { %2745 = vmatpush3.bf16.msra.mxu1 %v3121_v41 }
0x2444   :  { %2746 = vmatprep.subr.bf16.mxu1 %v2957_v3 }
0x2447   :  { %2748 = vmatpush3.bf16.msra.mxu1 %v3131_v44 }
0x2448   :  { %2749 = vmatprep.subr.bf16.mxu1 %v2957_v3 }
0x244b   :  { %2751 = vmatpush3.bf16.msra.mxu1 %v3142_v48 }
0x2511   :  { %v1547_v25 = vpop.f32.mrb[12].mxu1 }
0x2512   :  { %v1548_v26 = vadd.f32 %v3166_v54, %v1547_v25  ;;  %v2499_v28 = vpop.f32.mrb[13].mxu1 }
0x2514   :  { %2882 = vtanh.f32 %v1548_v26  ;;  %v2066_v2 = vmul.f32 -1.442695, %v1548_v26 }
0x2516   :  { %2884 = vpow2.f32 %v2066_v2 }
0x251e   :  { %v2883_v39 = vpop.eup %2882 }
0x251f   :  { %1560 = vrot.lane.b32.xlu1 %v2883_v39, %s2960_s13 }
0x2520   :  { %v2885_v29 = vpop.eup %2884 }
0x2521   :  { %v1554_v41 = vadd.f32 1.0, %v2885_v29 }
0x2523   :  { %2886 = vrcp.f32 %v1554_v41 }
0x252d   :  { %v2887_v30 = vpop.eup %2886 }
0x252e   :  { %v1558_v3 = vmul.f32 %v2887_v30, %v3416_v59 }
0x2591   :  { %v1561_v31 = vpop.permute.xlu1 %1560 }
0x2592   :  { %v1563_v44 = vmul.f32 %v2887_v30, %v1561_v31 }
0x2594   :  { %1565 = vrot.lane.b32.xlu0 %v1563_v44, %s2959_s29 }
0x2606   :  { %v1566_v48 = vpop.permute.xlu0 %1565 }
0x2607   :  { %v3463_v32 = vadd.f32 %v1566_v48, %v1558_v3  ;;  %v1905_v48 = vld [vmem:[%s3592_s7] sm:$0xff] }
0x2609   :  { %2888 = vtanh.f32 %v3463_v32 }
0x2613   :  { %v2889_v54 = vpop.eup %2888 }
0x2614   :  { %1571 = vrot.lane.b32.xlu1 %v2889_v54, %s2960_s13 }
0x2686   :  { %v1572_v33 = vpop.permute.xlu1 %1571 }
0x2687   :  { %v3467_v34 = vmul.f32 %v2887_v30, %v1572_v33 }
0x2689   :  { %1581 = vrot.lane.b32.xlu0 %v3467_v34, %s2960_s13 }
0x26fb   :  { %v1582_v36 = vpop.permute.xlu0 %1581 }
0x26fc   :  { %v1584_v37 = vsel %vm71_vm2, %v1475_v23, %v1582_v36 }
0x26fd   :  { %2517 = vmatmul.mubr.msk.f32.vlgmr.msra.gmra.mrb[14].mxu0 %vm74_vm3, %v1584_v37 }
0x26fe   :  { %2546 = vmatprep.mubr.msk.f32.mxu0 %vm71_vm2, %v1806_v35  ;;  %2755 = vmatpush3.bf16.msra.mxu0 %v2752_v1 }
0x26ff   :  { %2757 = vmatprep.subr.bf16.mxu0 %v2756_v6 }
0x2702   :  { %2759 = vmatpush3.bf16.msra.mxu0 %v2756_v6 }
0x27d0   :  { %v1656_v42 = vpop.f32.mrb[14].mxu0 }
0x27d1   :  { %v1660_v43 = vadd.f32 %v2067_v38, %v1656_v42  ;;  %v2518_v45 = vpop.f32.mrb[15].mxu0 }
0x27d3   :  { %v1661_v47 = vadd.f32 %v2906_v46, %v1660_v43 }
0x27d5   :  { %2890 = vtanh.f32 %v1661_v47  ;;  %v2069_v50 = vmul.f32 -1.442695, %v1661_v47 }
0x27d7   :  { %2892 = vpow2.f32 %v2069_v50 }
0x27df   :  { %v2891_v49 = vpop.eup %2890 }
0x27e0   :  { %1671 = vrot.lane.b32.xlu1 %v2891_v49, %s2960_s13 }
0x27e1   :  { %v2893_v51 = vpop.eup %2892 }
0x27e2   :  { %v1665_v52 = vadd.f32 1.0, %v2893_v51 }
0x27e4   :  { %2894 = vrcp.f32 %v1665_v52 }
0x27ee   :  { %v2895_v53 = vpop.eup %2894 }
0x27ef   :  { %v1669_v58 = vmul.f32 %v2895_v53, %v3442_v19 }
0x2852   :  { %v1672_v55 = vpop.permute.xlu1 %1671 }
0x2853   :  { %v1674_v56 = vmul.f32 %v2895_v53, %v1672_v55 }
0x2855   :  { %1676 = vrot.lane.b32.xlu0 %v1674_v56, %s2959_s29 }
0x28c7   :  { %v1677_v59 = vpop.permute.xlu0 %1676 }
0x28c8   :  { %v1679_v60 = vadd.f32 %v1677_v59, %v1669_v58 }
0x28ca   :  { %2896 = vtanh.f32 %v1679_v60 }
0x28d4   :  { %v2897_v61 = vpop.eup %2896 }
0x28d5   :  { %1682 = vrot.lane.b32.xlu1 %v2897_v61, %s2960_s13 }
0x2947   :  { %v1683_v8 = vpop.permute.xlu1 %1682 }
0x2948   :  { %v1685_v9 = vmul.f32 %v2895_v53, %v1683_v8 }
0x294a   :  { %1687 = vrot.lane.b32.xlu0 %v1685_v9, %s2959_s29 }
0x29bc   :  { %v1688_v7 = vpop.permute.xlu0 %1687 }
0x29bd   :  { %v1690_v10 = vsel %vm71_vm2, %v1688_v7, %v1582_v36  ;;  %1788 = vst.msk [vmem:[#allocation6 + $0xe] sm:$0x3] %vm40_vm0, %v1688_v7  ;;  %1794 = vst.msk [vmem:[#allocation2] sm:$0x3] %vm40_vm0, %v1688_v7 }
0x29be   :  { %2536 = vmatmul.mubr.msk.f32.vlgmr.msra.gmra.mrb[14].mxu1 %vm74_vm3, %v1690_v10 }
0x29c4   :  { %v1807_v11 = vld [vmem:[#allocation6 + $0x8] sm:$0xff] }
0x29c5   :  { %2547 = vmatmul.mubr.msk.f32.vlgmr.msra.gmra.mrb[16].mxu0 %vm71_vm2, %v1807_v11 }
0x2a91   :  { %v1760_v13 = vpop.f32.mrb[14].mxu1 }
0x2a92   :  { %v1761_v16 = vadd.f32 %v2907_v15, %v1760_v13  ;;  %v2537_v17 = vpop.f32.mrb[15].mxu1 }
0x2a94   :  { %2898 = vtanh.f32 %v1761_v16  ;;  %v2071_v24 = vmul.f32 -1.442695, %v1761_v16 }
0x2a96   :  { %2900 = vpow2.f32 %v2071_v24 }
0x2a98   :  { %v2548_v19 = vpop.f32.mrb[16].mxu0 }
0x2a99   :  { %v1897_v20 = vadd.f32 %v2548_v19, %v2072_v18  ;;  %v1891_v21 = vpop.f32.mrb[17].mxu0 }
0x2a9a   :  { %v1892_v22 = vadd.f32 %v2072_v18, %v1891_v21 }
0x2a9b   :  { %1902 = vst.msk [vmem:[#allocation8 + $0x8] sm:$0xff] %vm1900_vm4, %v1897_v20 }
0x2a9c   :  { %1901 = vst.msk [vmem:[#allocation8] sm:$0xff] %vm1900_vm4, %v1892_v22 }
0x2a9e   :  { %v2899_v23 = vpop.eup %2898 }
0x2a9f   :  { %1773 = vrot.lane.b32.xlu1 %v2899_v23, %s2960_s13 }
0x2aa0   :  { %v2901_v25 = vpop.eup %2900 }
0x2aa1   :  { %v1767_v26 = vadd.f32 1.0, %v2901_v25 }
0x2aa3   :  { %2902 = vrcp.f32 %v1767_v26 }
0x2aad   :  { %v2903_v28 = vpop.eup %2902 }
0x2aae   :  { %v1771_v29 = vmul.f32 %v2903_v28, %v3463_v32  ;;  %v1906_v32 = vld [vmem:[%s3592_s7 + $0x8] sm:$0xff] }
0x2aaf   :  { %v2760_v54 = vpack.c.bf16 %v1906_v32, %v1905_v48 }
0x2ab1   :  { %2761 = vmatprep.subr.bf16.mxu1 %v2760_v54 }
0x2ab2   :  { %2763 = vmatpush3.bf16.msra.mxu1 %v2760_v54 }
0x2b11   :  { %v1774_v39 = vpop.permute.xlu1 %1773 }
0x2b12   :  { %v1776_v2 = vmul.f32 %v2903_v28, %v1774_v39 }
0x2b14   :  { %1778 = vrot.lane.b32.xlu0 %v1776_v2, %s2959_s29 }
0x2b18   :  { %299 = vrot.lane.b32.xlu0 %v3175_v12, %s2959_s29 }
0x2b1c   :  { %725 = vrot.lane.b32.xlu0 %v3273_v40, %s2959_s29 }
0x2b20   :  { %1151 = vrot.lane.b32.xlu0 %v3371_v14, %s2959_s29 }
0x2b24   :  { %1577 = vrot.lane.b32.xlu0 %v3467_v34, %s2959_s29 }
0x2b28   :  { %1796 = vrot.lane.b32.xlu0 %v1679_v60, %s2961_s4 }
0x2b86   :  { %v1779_v41 = vpop.permute.xlu0 %1778 }
0x2b87   :  { %v1781_v30 = vadd.f32 %v1779_v41, %v1771_v29 }
0x2b89   :  { %2904 = vtanh.f32 %v1781_v30 }
0x2b8a   :  { %v300_v31 = vpop.permute.xlu0 %299 }
0x2b8b   :  { %302 = vst.msk [vmem:[#allocation7] sm:$0x3] %vm40_vm0, %v300_v31 }
0x2b8e   :  { %v726_v12 = vpop.permute.xlu0 %725 }
0x2b8f   :  { %728 = vst.msk [vmem:[#allocation7 + $0x4] sm:$0x3] %vm40_vm0, %v726_v12 }
0x2b92   :  { %v1152_v40 = vpop.permute.xlu0 %1151 }
0x2b93   :  { %v2905_v44 = vpop.eup %2904  ;;  %1154 = vst.msk [vmem:[#allocation7 + $0x8] sm:$0x3] %vm40_vm0, %v1152_v40 }
0x2b94   :  { %1784 = vrot.lane.b32.xlu1 %v2905_v44, %s2960_s13 }
0x2b96   :  { %v1578_v14 = vpop.permute.xlu0 %1577 }
0x2b97   :  { %1580 = vst.msk [vmem:[#allocation7 + $0xc] sm:$0x3] %vm40_vm0, %v1578_v14 }
0x2b98   :  { %512 = vrot.lane.b32.xlu1 %v3224_v57, %s2959_s29  ;;  %v1907_v57 = vld [vmem:[%s3592_s7 + $0x10] sm:$0xff] }
0x2b9a   :  { %v1797_v3 = vpop.permute.xlu0 %1796 }
0x2b9b   :  { %1799 = vst.msk [vmem:[#allocation3] sm:$0x3] %vm40_vm0, %v1797_v3 }
0x2b9c   :  { %938 = vrot.lane.b32.xlu1 %v3322_v27, %s2959_s29  ;;  %v1908_v27 = vld [vmem:[%s3592_s7 + $0x18] sm:$0xff]  ;;  %s2962_s7 = smov [#allocation8]  }
0x2ba0   :  { %1364 = vrot.lane.b32.xlu1 %v3420_v62, %s2959_s29  ;;  %v2764_v62 = vpack.c.bf16 %v1908_v27, %v1907_v57 }
0x2ba2   :  { %2765 = vmatprep.subr.bf16.mxu1 %v2764_v62 }
0x2ba3   :  { %2767 = vmatpush3.bf16.msra.mxu1 %v2764_v62 }
0x2c06   :  { %v1785_v33 = vpop.permute.xlu1 %1784 }
0x2c07   :  { %v1787_v34 = vmul.f32 %v2903_v28, %v1785_v33 }
0x2c09   :  { %1790 = vrot.lane.b32.xlu1 %v1787_v34, %s2959_s29  ;;  %s2004_s29 = sshll.u32 %s2962_s7, 4  ;;  %s2005_s29 = int_to_ptr.vmem [resolvable:$true] %s2004_s29 }
0x2c0a   :  { %v513_v36 = vpop.permute.xlu1 %512  ;;  %s2908_s23 = scalar_lea.vmem %s2005_s29, 256  ;;  %p2913_p1 = scmp.lt.s32.totalorder %s2005_s29, %s2005_s29 }
0x2c0b   :  { %515 = vst.msk [vmem:[#allocation7 + $0x2] sm:$0x3] %vm40_vm0, %v513_v36  ;;  %p2909_p0 = scmp.ne.s32.totalorder %s2005_s29, %s2908_s23  ;;  %p2914_p2 = scmp.lt.s32.totalorder %s2908_s23, %s2908_s23 }
0x2c0d   :  { %1802 = vrot.lane.b32.xlu1 %v1781_v30, %s2961_s4  ;;  %p2915_p3 = por %p2914_p2, %p2913_p1 }
0x2c0e   :  { %v939_v37 = vpop.permute.xlu1 %938 }
0x2c0f   :  { %941 = vst.msk [vmem:[#allocation7 + $0x6] sm:$0x3] %vm40_vm0, %v939_v37  ;;  %p2916_p4 = pnand %p2915_p3, %p2909_p0 }
0x2c12   :  { %v1365_v35 = vpop.permute.xlu1 %1364 }
0x2c13   :  { %1367 = vst.msk [vmem:[#allocation7 + $0xa] sm:$0x3] %vm40_vm0, %v1365_v35 }
0x2c16   :  { %v1903_v38 = vld [vmem:[#allocation7] sm:$0xff] }
0x2c17   :  { %2557 = vmatprep.mubr.msk.f32.mxu1 %vm71_vm2, %v1903_v38 }
0x2c7b   :  { %v1791_v42 = vpop.permute.xlu1 %1790 }
0x2c7c   :  { %1793 = vst.msk [vmem:[#allocation7 + $0xe] sm:$0x3] %vm40_vm0, %v1791_v42  ;;  %1800 = vst.msk [vmem:[#allocation4] sm:$0x3] %vm40_vm0, %v1791_v42 }
0x2c7f   :  { %v1803_v43 = vpop.permute.xlu1 %1802 }
0x2c80   :  { %1805 = vst.msk [vmem:[#allocation5] sm:$0x3] %vm40_vm0, %v1803_v43 }
0x2c83   :  { %v1904_v45 = vld [vmem:[#allocation7 + $0x8] sm:$0xff] }
0x2c84   :  { %2558 = vmatmul.mubr.msk.f32.vlgmr.msra.gmra.mrb[16].mxu1 %vm71_vm2, %v1904_v45 }
0x2c85   :  { %2919 = shalt.err (!%p2916_p4)
}
0x2c86   :  { %s2920_s26 = scalar_lea.hbm %s3594_s9, 256 }
0x2c87   :  { %p2921_p5 = scmp.ne.s32.totalorder %s3594_s9, %s2920_s26  ;;  %p2924_p6 = scmp.lt.u32.totalorder %s2920_s26, %s3594_s9 }
0x2c89   :  { %p2926_p7 = pnand %p2924_p6, %p2921_p5 }
0x2c8b   :  { %2929 = shalt.err (!%p2926_p7)
}
0x2c8c   :  { %s2963_s1 = smov 128   ;;  %s2964_s3 = smov 8   ;;  %v2075_v46 = vld [vmem:[%s3593_s8] ss:$0 sm:$0xff] }
0x2c8d   :  { %2010 = dma.vmem_to_hbm [thread:$0]  %s2005_s29, 256, %s3594_s9, [#allocation9], %s2963_s1, %s2963_s1, %s2964_s3  }
0x2c8e   :  { %s2965_s14 = smov [#allocation10]  }
0x2c8f   :  { %s2016_s15 = sshll.u32 %s2965_s14, 4  ;;  %s2017_s15 = int_to_ptr.vmem [resolvable:$true] %s2016_s15 }
0x2c90   :  { %s2930_s16 = scalar_lea.vmem %s2017_s15, 256  ;;  %p2935_p9 = scmp.lt.s32.totalorder %s2017_s15, %s2017_s15 }
0x2c91   :  { %p2931_p8 = scmp.ne.s32.totalorder %s2017_s15, %s2930_s16  ;;  %p2936_p10 = scmp.lt.s32.totalorder %s2930_s16, %s2930_s16 }
0x2c93   :  { %p2937_p11 = por %p2936_p10, %p2935_p9 }
0x2c95   :  { %p2938_p12 = pnand %p2937_p11, %p2931_p8 }
0x2d57   :  { %v2559_v47 = vpop.f32.mrb[16].mxu1 }
0x2d58   :  { %v1994_v49 = vadd.f32 %v2559_v47, %v2075_v46  ;;  %v1988_v50 = vpop.f32.mrb[17].mxu1 }
0x2d59   :  { %v1989_v51 = vadd.f32 %v2075_v46, %v1988_v50 }
0x2d5a   :  { %1998 = vst.msk [vmem:[#allocation10 + $0x8] sm:$0xff] %vm1900_vm4, %v1994_v49 }
0x2d5b   :  { %1997 = vst.msk [vmem:[#allocation10] sm:$0xff] %vm1900_vm4, %v1989_v51 }
0x2d5c   :  { %2941 = shalt.err (!%p2938_p12)
}
0x2d5d   :  { %s2942_s4 = scalar_lea.hbm %s3595_s10, 256 }
0x2d5e   :  { %p2943_p13 = scmp.ne.s32.totalorder %s3595_s10, %s2942_s4  ;;  %p2946_p0 = scmp.lt.u32.totalorder %s2942_s4, %s3595_s10 }
0x2d60   :  { %p2948_p1 = pnand %p2946_p0, %p2943_p13 }
0x2d62   :  { %2951 = shalt.err (!%p2948_p1)
}
0x2d63   :  { %2022 = dma.vmem_to_hbm [thread:$0]  %s2017_s15, 256, %s3595_s10, [#allocation11], %s2963_s1, %s2963_s1, %s2964_s3  }
0x2d64   :  { %2952 = dma.done.wait [#allocation9], 256  }
0x2d65   :  { %2953 = vsyncadd [#allocation9], 4294967040 }
0x2d66   :  { %2954 = dma.done.wait [#allocation11], 256  }
0x2d67   :  { %2955 = vsyncadd [#allocation11], 4294967040 }
0x2d68   :  { %2029 = vsyncpa [#allocation9], 1 }
0x2d69   :  { %2030 = vsyncpa [#allocation11], 1 }

</bundles_post_ra>
